<compile_context>
chip_gen: v5e
topology: v5e:2x2
jax: 0.10.0
libtpu: 0.0.40
codegen_flags: <defaults>
</compile_context>

<pallas_src>
import functools

import jax
import jax.numpy as jnp
from jax import lax
from jax.experimental import pallas as pl
from jax.experimental.pallas import tpu as pltpu


# ----------------------------------------------------------------------------
# Pallas kernel: one LSTM layer, both directions fused, time chunked.
# ----------------------------------------------------------------------------
def _lstm_recurrent_kernel(gx_ref, h0_ref, c0_ref, whh_ref,
                           out_ref, hn_ref, cn_ref,
                           h_scr, c_scr, *,
                           hidden_pad, chunk_t, seq_len, apply_mask):
    """grid = (num_dirs [parallel], num_chunks [arbitrary, innermost]).

    gx_ref : (chunk_t, Bp, 4*Hp)  precomputed x @ W_ih^T + b.  For d==1 (reverse) the
             index_map already hands us the time-reversed chunk; the kernel walks its
             local time axis backwards so absolute time decreases.
    whh_ref: (Hp, 4*Hp)           recurrent weights for this direction.
    out_ref: (chunk_t, Bp, Hp)    lane-block `d` of the (T_pad, Bp, D*Hp) output.
    hn/cn  : (Bp, Hp)             resident outputs, written only on the last chunk.
    """
    d = pl.program_id(0)
    c_idx = pl.program_id(1)
    n_chunks = pl.num_programs(1)

    @pl.when(c_idx == 0)
    def _():
        h_scr[...] = h0_ref[...].astype(jnp.float32)
        c_scr[...] = c0_ref[...].astype(jnp.float32)

    whh = whh_ref[...]                 # (Hp, 4Hp), resident across the loop
    Hp = hidden_pad
    # Absolute (unreversed) chunk index along time for this grid step.
    abs_chunk = c_idx + d * (n_chunks - 1 - 2 * c_idx)

    # TODO(synk): keep W_hh resident in the MXU across the time loop
    # (pltpu.matmul_push_rhs / matmul_acc_lhs) if the bundle dump shows the RHS being
    # re-pushed every step; jnp.dot is used here for portability.
    def step(s, carry):
        h, c = carry
        # Local time: forward walks 0..chunk_t-1, reverse walks chunk_t-1..0.
        t = s + d * (chunk_t - 1 - 2 * s)
        # Only one matmul on the serialized critical path (input proj is hoisted).
        gates = gx_ref[t].astype(jnp.float32) + jnp.dot(
            h.astype(whh.dtype), whh, preferred_element_type=jnp.float32)
        # PyTorch gate order: i, f, g, o.  Hp is a multiple of 128, so every slice is a
        # lane-aligned full-vreg slab (no XLU rotates, no masked stores).
        # TODO(synk): on v6e/v7x cast `gates` to bf16 before the nonlinearities to halve
        # EUP pushes; kept f32 so v5e (no bf16 VPU/EUP) stays optimal.
        i_g = jax.nn.sigmoid(gates[:, 0 * Hp:1 * Hp])
        f_g = jax.nn.sigmoid(gates[:, 1 * Hp:2 * Hp])
        g_g = jnp.tanh(gates[:, 2 * Hp:3 * Hp])
        o_g = jax.nn.sigmoid(gates[:, 3 * Hp:4 * Hp])
        c_new = f_g * c + i_g * g_g
        h_new = o_g * jnp.tanh(c_new)
        if apply_mask:
            valid = (abs_chunk * chunk_t + t) < seq_len
            h_new = jnp.where(valid, h_new, h)
            c_new = jnp.where(valid, c_new, c)
        out_ref[t] = h_new.astype(out_ref.dtype)
        return h_new, c_new

    h, c = lax.fori_loop(0, chunk_t, step, (h_scr[...], c_scr[...]),
                         unroll=min(8, chunk_t))
    h_scr[...] = h
    c_scr[...] = c

    @pl.when(c_idx == n_chunks - 1)
    def _():
        hn_ref[...] = h.astype(hn_ref.dtype)
        cn_ref[...] = c.astype(cn_ref.dtype)


# ----------------------------------------------------------------------------
# Helpers: hardware-aware tiling / padding.
# ----------------------------------------------------------------------------
def _round_up(x, m):
    return -(-x // m) * m


def _vmem_capacity_bytes():
    # Generation-aware VMEM budget (v7x: 64 MiB, v5e/v6e: 128 MiB).
    try:
        return int(pltpu.get_tpu_info().vmem_capacity_bytes)
    except Exception:
        return 128 * 1024 * 1024


def _choose_chunk_t(T, per_t_bytes, fixed_bytes, budget_bytes, max_chunk_t):
    hi = max(1, min(max_chunk_t, T))
    for c in range(hi, 0, -1):
        if fixed_bytes + c * per_t_bytes <= budget_bytes:
            return c
    return 1


def _pad_layer_params(wih_t, whh_t, b, layer, D, H, Hp):
    """Zero-pad per-gate blocks H -> Hp (and the hidden input axes) so the kernel works
    on lane-aligned (.., 4*Hp) gates.  Padded units provably stay at 0."""
    def pad_gates(w):
        lead = w.shape[:-1]
        w = w.reshape(lead + (4, H))
        w = jnp.pad(w, [(0, 0)] * len(lead) + [(0, 0), (0, Hp - H)])
        return w.reshape(lead + (4 * Hp,))

    if layer == 0:
        wih_p = pad_gates(wih_t)                                    # (D, E, 4Hp)
    else:
        w = wih_t.reshape(D, D, H, 4 * H)                           # in_dim == D*H
        w = jnp.pad(w, ((0, 0), (0, 0), (0, Hp - H), (0, 0)))
        wih_p = pad_gates(w.reshape(D, D * Hp, 4 * H))              # (D, D*Hp, 4Hp)
    whh_p = pad_gates(jnp.pad(whh_t, ((0, 0), (0, Hp - H), (0, 0))))  # (D, Hp, 4Hp)
    b_p = pad_gates(b)                                              # (D, 4Hp)
    return wih_p, whh_p, b_p


# ----------------------------------------------------------------------------
# One layer: pallas_call over grid (num_dirs, num_chunks).
# ----------------------------------------------------------------------------
def lstm_layer(gx, h0, c0, whh, *, seq_len, chunk_t, out_dtype, vmem_limit):
    """gx: (D, T_pad, Bp, 4Hp) in absolute time order; whh: (D, Hp, 4Hp); h0/c0 (D,Bp,Hp).
    Returns out (T_pad, Bp, D*Hp) in absolute time order, h_n, c_n (D, Bp, Hp)."""
    D, T_pad, Bp, G4 = gx.shape
    Hp = h0.shape[-1]
    num_chunks = T_pad // chunk_t
    apply_mask = (T_pad != seq_len)
    sq = pl.Squeezed()

    # Reverse direction (d==1) visits chunks last-to-first; forward visits in order.
    def gx_map(d, c):
        return (d, c + d * (num_chunks - 1 - 2 * c), 0, 0)

    def out_map(d, c):
        # Direction d writes lane-block d of the fused (T_pad, Bp, D*Hp) output.
        return (c + d * (num_chunks - 1 - 2 * c), 0, d)

    # TODO(synk): whh/h0/c0 block indices are constant along the chunk axis; single-
    # buffer them (pipeline_mode=pl.Buffered(1)) to reclaim VMEM at large H.
    out, hn, cn = pl.pallas_call(
        functools.partial(_lstm_recurrent_kernel, hidden_pad=Hp, chunk_t=chunk_t,
                          seq_len=seq_len, apply_mask=apply_mask),
        grid=(D, num_chunks),
        in_specs=[
            pl.BlockSpec((sq, chunk_t, Bp, G4), gx_map),            # gx
            pl.BlockSpec((sq, Bp, Hp), lambda d, c: (d, 0, 0)),     # h0
            pl.BlockSpec((sq, Bp, Hp), lambda d, c: (d, 0, 0)),     # c0
            pl.BlockSpec((sq, Hp, G4), lambda d, c: (d, 0, 0)),     # W_hh^T
        ],
        out_specs=[
            pl.BlockSpec((chunk_t, Bp, Hp), out_map),               # fused output
            pl.BlockSpec((sq, Bp, Hp), lambda d, c: (d, 0, 0)),     # h_n (resident)
            pl.BlockSpec((sq, Bp, Hp), lambda d, c: (d, 0, 0)),     # c_n (resident)
        ],
        out_shape=[
            jax.ShapeDtypeStruct((T_pad, Bp, D * Hp), out_dtype),
            jax.ShapeDtypeStruct((D, Bp, Hp), out_dtype),
            jax.ShapeDtypeStruct((D, Bp, Hp), out_dtype),
        ],
        scratch_shapes=[
            pltpu.VMEM((Bp, Hp), jnp.float32),   # recurrent h (per core)
            pltpu.VMEM((Bp, Hp), jnp.float32),   # recurrent c (per core)
        ],
        compiler_params=pltpu.CompilerParams(
            # TODO(synk): on v7x verify the 'parallel' direction axis really lands on
            # both TensorCores (bundle/schedule check); fall back to core_map if not.
            dimension_semantics=("parallel", "arbitrary"),
            vmem_limit_bytes=vmem_limit),
    )(gx, h0, c0, whh)
    return out, hn, cn


# ----------------------------------------------------------------------------
# Full LSTMEncoder forward (multi-layer, bidirectional).
# ----------------------------------------------------------------------------
def lstm_encoder_forward(x, params, hidden=None, *, hidden_dim, n_layers,
                         bidirectional, max_chunk_t=64, matmul_dtype=jnp.float32):
    T, B, _ = x.shape
    D = 2 if bidirectional else 1
    H = hidden_dim
    Hp = _round_up(H, 128)      # lane-dense gates / stores
    Bp = _round_up(B, 8)        # full sublanes
    out_dtype = x.dtype

    # Hardware-aware chunk size + VMEM limit.
    budget = int(0.72 * _vmem_capacity_bytes())
    mm_i = jnp.dtype(matmul_dtype).itemsize
    out_i = jnp.dtype(out_dtype).itemsize
    fixed = (2 * Hp * 4 * Hp * mm_i            # whh (double-buffered)
             + 8 * Bp * Hp * out_i             # h0/c0/hn/cn buffers
             + 2 * Bp * Hp * 4)                # f32 state scratch
    per_t = 2 * (Bp * 4 * Hp * mm_i + Bp * Hp * out_i)   # gx + out, double-buffered
    chunk_t = _choose_chunk_t(T, per_t, fixed, budget, max_chunk_t)
    T_pad = _round_up(T, chunk_t)
    vmem_limit = int(min(budget, max(32 * 2 ** 20, 2 * (fixed + chunk_t * per_t))))

    # Pad input / initial state once (zeros).  Padded batch rows and hidden units are
    # independent / provably stay zero and are sliced off at the end.
    x_p = jnp.pad(x, ((0, T_pad - T), (0, Bp - B), (0, 0)))
    if hidden is None:
        h0 = jnp.zeros((n_layers * D, Bp, Hp), x.dtype)
        c0 = jnp.zeros((n_layers * D, Bp, Hp), x.dtype)
    else:
        h0_raw, c0_raw = hidden
        pad = ((0, 0), (0, Bp - B), (0, Hp - H))
        h0 = jnp.pad(h0_raw.astype(x.dtype), pad)
        c0 = jnp.pad(c0_raw.astype(x.dtype), pad)

    layer_input = x_p
    h_n, c_n = [], []
    for layer in range(n_layers):
        wih_t, whh_t, b = params[layer]     # raw: (D, in, 4H), (D, H, 4H), (D, 4H)
        wih_p, whh_p, b_p = _pad_layer_params(wih_t, whh_t, b, layer, D, H, Hp)
        # Hoisted input projection: one big MXU matmul over all T*B rows, bias folded
        # in.  Stream gx (the dominant HBM stream) and W_hh in matmul_dtype (bf16 on
        # v6e/v7x halves the DMA and the gx VMEM block).
        gx = jnp.einsum('tbe,deg->dtbg',
                        layer_input.astype(jnp.float32),
                        wih_p.astype(jnp.float32)) + b_p[:, None, None, :]
        gx = gx.astype(matmul_dtype)

        h0_l = h0[layer * D:(layer + 1) * D]
        c0_l = c0[layer * D:(layer + 1) * D]
        out, hn, cn = lstm_layer(gx, h0_l, c0_l, whh_p.astype(matmul_dtype),
                                 seq_len=T, chunk_t=chunk_t,
                                 out_dtype=out_dtype, vmem_limit=vmem_limit)
        layer_input = out                   # (T_pad, Bp, D*Hp); padded cols are zero
        h_n.append(hn)
        c_n.append(cn)
        # TODO(synk): nn.LSTM inter-layer dropout (p=0.5) applies only in training
        # mode; eval-mode semantics (no dropout) are implemented here.

    if D == 2:
        y = jnp.concatenate([layer_input[:T, :B, :H],
                             layer_input[:T, :B, Hp:Hp + H]], axis=-1)
    else:
        y = layer_input[:T, :B, :H]
    h_n = jnp.concatenate(h_n, axis=0)[:, :B, :H]
    c_n = jnp.concatenate(c_n, axis=0)[:, :B, :H]
    return y, (h_n, c_n)


# ----------------------------------------------------------------------------
# Deterministic parameter init (PyTorch-style U(-1/sqrt(H), 1/sqrt(H))),
# pre-transposed and stacked per direction (raw, unpadded).
# ----------------------------------------------------------------------------
def init_lstm_params(key, embedding_dim, hidden_dim, n_layers, bidirectional):
    D = 2 if bidirectional else 1
    bound = float(hidden_dim) ** -0.5
    params = {}
    for layer in range(n_layers):
        in_dim = embedding_dim if layer == 0 else hidden_dim * D
        wih_l, whh_l, b_l = [], [], []
        for _ in range(D):
            key, k1, k2, k3, k4 = jax.random.split(key, 5)
            w_ih = jax.random.uniform(k1, (4 * hidden_dim, in_dim),
                                      jnp.float32, -bound, bound)
            w_hh = jax.random.uniform(k2, (4 * hidden_dim, hidden_dim),
                                      jnp.float32, -bound, bound)
            b_ih = jax.random.uniform(k3, (4 * hidden_dim,), jnp.float32, -bound, bound)
            b_hh = jax.random.uniform(k4, (4 * hidden_dim,), jnp.float32, -bound, bound)
            wih_l.append(w_ih.T)
            whh_l.append(w_hh.T)
            b_l.append(b_ih + b_hh)
        params[layer] = (jnp.stack(wih_l), jnp.stack(whh_l), jnp.stack(b_l))
    return params


# ----------------------------------------------------------------------------
# Pure-JAX reference (lax.scan) for correctness checking.
# ----------------------------------------------------------------------------
def _ref_single_direction(x, h0, c0, w_ih_t, w_hh_t, b, reverse):
    H = h0.shape[-1]

    def step(carry, x_t):
        h, c = carry
        gates = x_t @ w_ih_t + h @ w_hh_t + b
        i = jax.nn.sigmoid(gates[:, 0 * H:1 * H])
        f = jax.nn.sigmoid(gates[:, 1 * H:2 * H])
        g = jnp.tanh(gates[:, 2 * H:3 * H])
        o = jax.nn.sigmoid(gates[:, 3 * H:4 * H])
        c = f * c + i * g
        h = o * jnp.tanh(c)
        return (h, c), h

    xs = x[::-1] if reverse else x
    (hn, cn), ys = lax.scan(step, (h0, c0), xs)
    if reverse:
        ys = ys[::-1]
    return ys, hn, cn


def ref_forward(x, params, hidden, *, hidden_dim, n_layers, bidirectional):
    T, B, _ = x.shape
    D = 2 if bidirectional else 1
    if hidden is None:
        h0 = jnp.zeros((n_layers * D, B, hidden_dim), x.dtype)
        c0 = jnp.zeros((n_layers * D, B, hidden_dim), x.dtype)
    else:
        h0, c0 = hidden
    layer_input = x
    h_n, c_n = [], []
    for layer in range(n_layers):
        wih_t, whh_t, b = params[layer]
        outs = []
        for d in range(D):
            idx = layer * D + d
            y, hn, cn = _ref_single_direction(layer_input, h0[idx], c0[idx],
                                              wih_t[d], whh_t[d], b[d], d == 1)
            outs.append(y)
            h_n.append(hn)
            c_n.append(cn)
        layer_input = jnp.concatenate(outs, axis=-1) if D == 2 else outs[0]
    return layer_input, (jnp.stack(h_n, 0), jnp.stack(c_n, 0))


if __name__ == "__main__":
    # LSTMEncoder(embedding_dim=16, hidden_dim=32, n_layers=2, brnn=True) applied to
    # an input of shape (seq_len=8, batch=2, embedding_dim=16).
    T, B, E, H, L = 8, 2, 16, 32, 2
    BIDIR = True

    key = jax.random.PRNGKey(0)
    k_x, k_p, k_x2 = jax.random.split(key, 3)
    x = jax.random.normal(k_x, (T, B, E), jnp.float32)
    params = init_lstm_params(k_p, E, H, L, BIDIR)

    ref_out, (ref_h, ref_c) = ref_forward(
        x, params, None, hidden_dim=H, n_layers=L, bidirectional=BIDIR)

    # 1) f32, forced multi-chunk (chunk_t=4 -> 2 chunks): exercises the chunk carry and
    #    the reverse-direction index_map.
    out, (h_n, c_n) = lstm_encoder_forward(
        x, params, None, hidden_dim=H, n_layers=L, bidirectional=BIDIR, max_chunk_t=4)
    jax.block_until_ready((out, h_n, c_n))
    assert out.shape == (T, B, 2 * H), out.shape
    assert h_n.shape == (L * 2, B, H), h_n.shape
    assert c_n.shape == (L * 2, B, H), c_n.shape
    assert jnp.allclose(out, ref_out, atol=3e-5, rtol=3e-5)
    assert jnp.allclose(h_n, ref_h, atol=3e-5, rtol=3e-5)
    assert jnp.allclose(c_n, ref_c, atol=3e-5, rtol=3e-5)

    # 2) f32, awkward T=7 (prime-ish): T padded to 8, tail timestep masked in-kernel.
    x7 = jax.random.normal(k_x2, (7, B, E), jnp.float32)
    out7, (h7, c7) = lstm_encoder_forward(
        x7, params, None, hidden_dim=H, n_layers=L, bidirectional=BIDIR, max_chunk_t=4)
    jax.block_until_ready((out7, h7, c7))
    r_out7, (r_h7, r_c7) = ref_forward(
        x7, params, None, hidden_dim=H, n_layers=L, bidirectional=BIDIR)
    assert jnp.allclose(out7, r_out7, atol=3e-5, rtol=3e-5)
    assert jnp.allclose(h7, r_h7, atol=3e-5, rtol=3e-5)
    assert jnp.allclose(c7, r_c7, atol=3e-5, rtol=3e-5)

    # 3) bf16 gx / W_hh streams (v6e/v7x fast path); gate math and state stay f32.
    out_bf, (h_bf, c_bf) = lstm_encoder_forward(
        x, params, None, hidden_dim=H, n_layers=L, bidirectional=BIDIR,
        matmul_dtype=jnp.bfloat16)
    jax.block_until_ready((out_bf, h_bf, c_bf))
    assert jnp.allclose(out_bf, ref_out, atol=5e-2, rtol=5e-2)
    assert jnp.allclose(h_bf, ref_h, atol=5e-2, rtol=5e-2)
    assert jnp.allclose(c_bf, ref_c, atol=5e-2, rtol=5e-2)

    print("KERNEL_OK")
</pallas_src>

<mosaic_0001>
module attributes {stable_mosaic.version = 11 : i64} {
  func.func @_lstm_recurrent_kernel(%arg0: i32, %arg1: i32, %arg2: memref<1x4x8x512xf32, #tpu.memory_space<vmem>>, %arg3: memref<1x8x128xf32, #tpu.memory_space<vmem>>, %arg4: memref<1x8x128xf32, #tpu.memory_space<vmem>>, %arg5: memref<1x128x512xf32, #tpu.memory_space<vmem>>, %arg6: memref<4x8x128xf32, #tpu.memory_space<vmem>>, %arg7: memref<1x8x128xf32, #tpu.memory_space<vmem>>, %arg8: memref<1x8x128xf32, #tpu.memory_space<vmem>>, %arg9: memref<8x128xf32, #tpu.memory_space<vmem>>, %arg10: memref<8x128xf32, #tpu.memory_space<vmem>>) attributes {dimension_semantics = [#tpu.dimension_semantics<parallel>, #tpu.dimension_semantics<arbitrary>], iteration_bounds = array<i64: 2, 2>, scalar_prefetch = 0 : i64, scratch_operands = 2 : i64, tpu.core_type = #tpu.core_type<tc>, window_params = [{transform_indices = @transform_0, window_bounds = array<i64: 1, 4, 8, 512>}, {transform_indices = @transform_1, window_bounds = array<i64: 1, 8, 128>}, {transform_indices = @transform_2, window_bounds = array<i64: 1, 8, 128>}, {transform_indices = @transform_3, window_bounds = array<i64: 1, 128, 512>}, {transform_indices = @transform_4, window_bounds = array<i64: 4, 8, 128>}, {transform_indices = @transform_5, window_bounds = array<i64: 1, 8, 128>}, {transform_indices = @transform_6, window_bounds = array<i64: 1, 8, 128>}]} {
    %c0_i32 = arith.constant 0 : i32
    %0 = arith.cmpi eq, %arg1, %c0_i32 : i32
    %1 = arith.extui %0 : i1 to i32
    %c0_i32_0 = arith.constant 0 : i32
    %2 = arith.cmpi ne, %1, %c0_i32_0 : i32
    scf.if %2 {
      %c0_57 = arith.constant 0 : index
      %c0_58 = arith.constant 0 : index
      %c0_59 = arith.constant 0 : index
      %164 = vector.load %arg3[%c0_57, %c0_58, %c0_59] : memref<1x8x128xf32, #tpu.memory_space<vmem>>, vector<1x8x128xf32>
      %165 = vector.shape_cast %164 : vector<1x8x128xf32> to vector<8x128xf32>
      %c0_60 = arith.constant 0 : index
      %c0_61 = arith.constant 0 : index
      %166 = vector.load %arg9[%c0_60, %c0_61] : memref<8x128xf32, #tpu.memory_space<vmem>>, vector<8x128xf32>
      tpu.vector_store %arg9[%c0_60, %c0_61], %165 {strides = array<i32>} : memref<8x128xf32, #tpu.memory_space<vmem>>, vector<8x128xf32>,
      %c0_62 = arith.constant 0 : index
      %c0_63 = arith.constant 0 : index
      %c0_64 = arith.constant 0 : index
      %167 = vector.load %arg4[%c0_62, %c0_63, %c0_64] : memref<1x8x128xf32, #tpu.memory_space<vmem>>, vector<1x8x128xf32>
      %168 = vector.shape_cast %167 : vector<1x8x128xf32> to vector<8x128xf32>
      %c0_65 = arith.constant 0 : index
      %c0_66 = arith.constant 0 : index
      %169 = vector.load %arg10[%c0_65, %c0_66] : memref<8x128xf32, #tpu.memory_space<vmem>>, vector<8x128xf32>
      tpu.vector_store %arg10[%c0_65, %c0_66], %168 {strides = array<i32>} : memref<8x128xf32, #tpu.memory_space<vmem>>, vector<8x128xf32>,
    } else {
    }
    %c0 = arith.constant 0 : index
    %c0_1 = arith.constant 0 : index
    %c0_2 = arith.constant 0 : index
    %3 = vector.load %arg5[%c0, %c0_1, %c0_2] : memref<1x128x512xf32, #tpu.memory_space<vmem>>, vector<1x128x512xf32>
    %4 = vector.shape_cast %3 : vector<1x128x512xf32> to vector<128x512xf32>
    %c0_3 = arith.constant 0 : index
    %c0_4 = arith.constant 0 : index
    %5 = vector.load %arg9[%c0_3, %c0_4] : memref<8x128xf32, #tpu.memory_space<vmem>>, vector<8x128xf32>
    %c0_5 = arith.constant 0 : index
    %c0_6 = arith.constant 0 : index
    %6 = vector.load %arg10[%c0_5, %c0_6] : memref<8x128xf32, #tpu.memory_space<vmem>>, vector<8x128xf32>
    %c0_i32_7 = arith.constant 0 : i32
    %c2_i32 = arith.constant 2 : i32
    %7 = arith.muli %c2_i32, %c0_i32_7 : i32
    %c3_i32 = arith.constant 3 : i32
    %8 = arith.subi %c3_i32, %7 : i32
    %9 = arith.muli %arg0, %8 : i32
    %10 = arith.addi %c0_i32_7, %9 : i32
    %c0_8 = arith.constant 0 : index
    %11 = arith.index_cast %10 : i32 to index
    %c0_9 = arith.constant 0 : index
    %c0_10 = arith.constant 0 : index
    %12 = vector.load %arg2[%c0_8, %11, %c0_9, %c0_10] : memref<1x4x8x512xf32, #tpu.memory_space<vmem>>, vector<1x1x8x512xf32>
    %13 = vector.shape_cast %12 : vector<1x1x8x512xf32> to vector<8x512xf32>
    %cst = arith.constant dense<0.000000e+00> : vector<8x512xf32>
    %14 = tpu.matmul %5, %4, %cst {dimension_numbers = #tpu.dot_dimension_numbers<[1], [0], [0], [1], [0, 0, 1, 1], [], []>} : vector<8x128xf32>, vector<128x512xf32>, vector<8x512xf32> -> vector<8x512xf32>
    %15 = arith.addf %13, %14 : vector<8x512xf32>
    %16 = vector.extract_strided_slice %15 {offsets = [0, 0], sizes = [8, 128], strides = [1, 1]} : vector<8x512xf32> to vector<8x128xf32>
    %17 = arith.negf %16 : vector<8x128xf32>
    %18 = math.exp %17 : vector<8x128xf32>
    %cst_11 = arith.constant 1.000000e+00 : f32
    %19 = vector.broadcast %cst_11 : f32 to vector<8x128xf32>
    %20 = arith.addf %19, %18 : vector<8x128xf32>
    %21 = arith.divf %19, %20 : vector<8x128xf32>
    %22 = vector.extract_strided_slice %15 {offsets = [0, 128], sizes = [8, 128], strides = [1, 1]} : vector<8x512xf32> to vector<8x128xf32>
    %23 = arith.negf %22 : vector<8x128xf32>
    %24 = math.exp %23 : vector<8x128xf32>
    %cst_12 = arith.constant 1.000000e+00 : f32
    %25 = vector.broadcast %cst_12 : f32 to vector<8x128xf32>
    %26 = arith.addf %25, %24 : vector<8x128xf32>
    %27 = arith.divf %25, %26 : vector<8x128xf32>
    %28 = vector.extract_strided_slice %15 {offsets = [0, 256], sizes = [8, 128], strides = [1, 1]} : vector<8x512xf32> to vector<8x128xf32>
    %29 = math.tanh %28 : vector<8x128xf32>
    %30 = vector.extract_strided_slice %15 {offsets = [0, 384], sizes = [8, 128], strides = [1, 1]} : vector<8x512xf32> to vector<8x128xf32>
    %31 = arith.negf %30 : vector<8x128xf32>
    %32 = math.exp %31 : vector<8x128xf32>
    %cst_13 = arith.constant 1.000000e+00 : f32
    %33 = vector.broadcast %cst_13 : f32 to vector<8x128xf32>
    %34 = arith.addf %33, %32 : vector<8x128xf32>
    %35 = arith.divf %33, %34 : vector<8x128xf32>
    %36 = arith.mulf %27, %6 : vector<8x128xf32>
    %37 = arith.mulf %21, %29 : vector<8x128xf32>
    %38 = arith.addf %36, %37 : vector<8x128xf32>
    %39 = math.tanh %38 : vector<8x128xf32>
    %40 = arith.mulf %35, %39 : vector<8x128xf32>
    %41 = arith.index_cast %10 : i32 to index
    %c0_14 = arith.constant 0 : index
    %c0_15 = arith.constant 0 : index
    %42 = vector.load %arg6[%41, %c0_14, %c0_15] : memref<4x8x128xf32, #tpu.memory_space<vmem>>, vector<1x8x128xf32>
    %43 = vector.shape_cast %42 : vector<1x8x128xf32> to vector<8x128xf32>
    %44 = vector.shape_cast %40 : vector<8x128xf32> to vector<1x8x128xf32>
    tpu.vector_store %arg6[%41, %c0_14, %c0_15], %44 {strides = array<i32>} : memref<4x8x128xf32, #tpu.memory_space<vmem>>, vector<1x8x128xf32>,
    %c1_i32 = arith.constant 1 : i32
    %c2_i32_16 = arith.constant 2 : i32
    %45 = arith.muli %c2_i32_16, %c1_i32 : i32
    %c3_i32_17 = arith.constant 3 : i32
    %46 = arith.subi %c3_i32_17, %45 : i32
    %47 = arith.muli %arg0, %46 : i32
    %48 = arith.addi %c1_i32, %47 : i32
    %c0_18 = arith.constant 0 : index
    %49 = arith.index_cast %48 : i32 to index
    %c0_19 = arith.constant 0 : index
    %c0_20 = arith.constant 0 : index
    %50 = vector.load %arg2[%c0_18, %49, %c0_19, %c0_20] : memref<1x4x8x512xf32, #tpu.memory_space<vmem>>, vector<1x1x8x512xf32>
    %51 = vector.shape_cast %50 : vector<1x1x8x512xf32> to vector<8x512xf32>
    %cst_21 = arith.constant dense<0.000000e+00> : vector<8x512xf32>
    %52 = tpu.matmul %40, %4, %cst_21 {dimension_numbers = #tpu.dot_dimension_numbers<[1], [0], [0], [1], [0, 0, 1, 1], [], []>} : vector<8x128xf32>, vector<128x512xf32>, vector<8x512xf32> -> vector<8x512xf32>
    %53 = arith.addf %51, %52 : vector<8x512xf32>
    %54 = vector.extract_strided_slice %53 {offsets = [0, 0], sizes = [8, 128], strides = [1, 1]} : vector<8x512xf32> to vector<8x128xf32>
    %55 = arith.negf %54 : vector<8x128xf32>
    %56 = math.exp %55 : vector<8x128xf32>
    %cst_22 = arith.constant 1.000000e+00 : f32
    %57 = vector.broadcast %cst_22 : f32 to vector<8x128xf32>
    %58 = arith.addf %57, %56 : vector<8x128xf32>
    %59 = arith.divf %57, %58 : vector<8x128xf32>
    %60 = vector.extract_strided_slice %53 {offsets = [0, 128], sizes = [8, 128], strides = [1, 1]} : vector<8x512xf32> to vector<8x128xf32>
    %61 = arith.negf %60 : vector<8x128xf32>
    %62 = math.exp %61 : vector<8x128xf32>
    %cst_23 = arith.constant 1.000000e+00 : f32
    %63 = vector.broadcast %cst_23 : f32 to vector<8x128xf32>
    %64 = arith.addf %63, %62 : vector<8x128xf32>
    %65 = arith.divf %63, %64 : vector<8x128xf32>
    %66 = vector.extract_strided_slice %53 {offsets = [0, 256], sizes = [8, 128], strides = [1, 1]} : vector<8x512xf32> to vector<8x128xf32>
    %67 = math.tanh %66 : vector<8x128xf32>
    %68 = vector.extract_strided_slice %53 {offsets = [0, 384], sizes = [8, 128], strides = [1, 1]} : vector<8x512xf32> to vector<8x128xf32>
    %69 = arith.negf %68 : vector<8x128xf32>
    %70 = math.exp %69 : vector<8x128xf32>
    %cst_24 = arith.constant 1.000000e+00 : f32
    %71 = vector.broadcast %cst_24 : f32 to vector<8x128xf32>
    %72 = arith.addf %71, %70 : vector<8x128xf32>
    %73 = arith.divf %71, %72 : vector<8x128xf32>
    %74 = arith.mulf %65, %38 : vector<8x128xf32>
    %75 = arith.mulf %59, %67 : vector<8x128xf32>
    %76 = arith.addf %74, %75 : vector<8x128xf32>
    %77 = math.tanh %76 : vector<8x128xf32>
    %78 = arith.mulf %73, %77 : vector<8x128xf32>
    %79 = arith.index_cast %48 : i32 to index
    %c0_25 = arith.constant 0 : index
    %c0_26 = arith.constant 0 : index
    %80 = vector.load %arg6[%79, %c0_25, %c0_26] : memref<4x8x128xf32, #tpu.memory_space<vmem>>, vector<1x8x128xf32>
    %81 = vector.shape_cast %80 : vector<1x8x128xf32> to vector<8x128xf32>
    %82 = vector.shape_cast %78 : vector<8x128xf32> to vector<1x8x128xf32>
    tpu.vector_store %arg6[%79, %c0_25, %c0_26], %82 {strides = array<i32>} : memref<4x8x128xf32, #tpu.memory_space<vmem>>, vector<1x8x128xf32>,
    %c2_i32_27 = arith.constant 2 : i32
    %c2_i32_28 = arith.constant 2 : i32
    %83 = arith.muli %c2_i32_28, %c2_i32_27 : i32
    %c3_i32_29 = arith.constant 3 : i32
    %84 = arith.subi %c3_i32_29, %83 : i32
    %85 = arith.muli %arg0, %84 : i32
    %86 = arith.addi %c2_i32_27, %85 : i32
    %c0_30 = arith.constant 0 : index
    %87 = arith.index_cast %86 : i32 to index
    %c0_31 = arith.constant 0 : index
    %c0_32 = arith.constant 0 : index
    %88 = vector.load %arg2[%c0_30, %87, %c0_31, %c0_32] : memref<1x4x8x512xf32, #tpu.memory_space<vmem>>, vector<1x1x8x512xf32>
    %89 = vector.shape_cast %88 : vector<1x1x8x512xf32> to vector<8x512xf32>
    %cst_33 = arith.constant dense<0.000000e+00> : vector<8x512xf32>
    %90 = tpu.matmul %78, %4, %cst_33 {dimension_numbers = #tpu.dot_dimension_numbers<[1], [0], [0], [1], [0, 0, 1, 1], [], []>} : vector<8x128xf32>, vector<128x512xf32>, vector<8x512xf32> -> vector<8x512xf32>
    %91 = arith.addf %89, %90 : vector<8x512xf32>
    %92 = vector.extract_strided_slice %91 {offsets = [0, 0], sizes = [8, 128], strides = [1, 1]} : vector<8x512xf32> to vector<8x128xf32>
    %93 = arith.negf %92 : vector<8x128xf32>
    %94 = math.exp %93 : vector<8x128xf32>
    %cst_34 = arith.constant 1.000000e+00 : f32
    %95 = vector.broadcast %cst_34 : f32 to vector<8x128xf32>
    %96 = arith.addf %95, %94 : vector<8x128xf32>
    %97 = arith.divf %95, %96 : vector<8x128xf32>
    %98 = vector.extract_strided_slice %91 {offsets = [0, 128], sizes = [8, 128], strides = [1, 1]} : vector<8x512xf32> to vector<8x128xf32>
    %99 = arith.negf %98 : vector<8x128xf32>
    %100 = math.exp %99 : vector<8x128xf32>
    %cst_35 = arith.constant 1.000000e+00 : f32
    %101 = vector.broadcast %cst_35 : f32 to vector<8x128xf32>
    %102 = arith.addf %101, %100 : vector<8x128xf32>
    %103 = arith.divf %101, %102 : vector<8x128xf32>
    %104 = vector.extract_strided_slice %91 {offsets = [0, 256], sizes = [8, 128], strides = [1, 1]} : vector<8x512xf32> to vector<8x128xf32>
    %105 = math.tanh %104 : vector<8x128xf32>
    %106 = vector.extract_strided_slice %91 {offsets = [0, 384], sizes = [8, 128], strides = [1, 1]} : vector<8x512xf32> to vector<8x128xf32>
    %107 = arith.negf %106 : vector<8x128xf32>
    %108 = math.exp %107 : vector<8x128xf32>
    %cst_36 = arith.constant 1.000000e+00 : f32
    %109 = vector.broadcast %cst_36 : f32 to vector<8x128xf32>
    %110 = arith.addf %109, %108 : vector<8x128xf32>
    %111 = arith.divf %109, %110 : vector<8x128xf32>
    %112 = arith.mulf %103, %76 : vector<8x128xf32>
    %113 = arith.mulf %97, %105 : vector<8x128xf32>
    %114 = arith.addf %112, %113 : vector<8x128xf32>
    %115 = math.tanh %114 : vector<8x128xf32>
    %116 = arith.mulf %111, %115 : vector<8x128xf32>
    %117 = arith.index_cast %86 : i32 to index
    %c0_37 = arith.constant 0 : index
    %c0_38 = arith.constant 0 : index
    %118 = vector.load %arg6[%117, %c0_37, %c0_38] : memref<4x8x128xf32, #tpu.memory_space<vmem>>, vector<1x8x128xf32>
    %119 = vector.shape_cast %118 : vector<1x8x128xf32> to vector<8x128xf32>
    %120 = vector.shape_cast %116 : vector<8x128xf32> to vector<1x8x128xf32>
    tpu.vector_store %arg6[%117, %c0_37, %c0_38], %120 {strides = array<i32>} : memref<4x8x128xf32, #tpu.memory_space<vmem>>, vector<1x8x128xf32>,
    %c3_i32_39 = arith.constant 3 : i32
    %c2_i32_40 = arith.constant 2 : i32
    %121 = arith.muli %c2_i32_40, %c3_i32_39 : i32
    %c3_i32_41 = arith.constant 3 : i32
    %122 = arith.subi %c3_i32_41, %121 : i32
    %123 = arith.muli %arg0, %122 : i32
    %124 = arith.addi %c3_i32_39, %123 : i32
    %c0_42 = arith.constant 0 : index
    %125 = arith.index_cast %124 : i32 to index
    %c0_43 = arith.constant 0 : index
    %c0_44 = arith.constant 0 : index
    %126 = vector.load %arg2[%c0_42, %125, %c0_43, %c0_44] : memref<1x4x8x512xf32, #tpu.memory_space<vmem>>, vector<1x1x8x512xf32>
    %127 = vector.shape_cast %126 : vector<1x1x8x512xf32> to vector<8x512xf32>
    %cst_45 = arith.constant dense<0.000000e+00> : vector<8x512xf32>
    %128 = tpu.matmul %116, %4, %cst_45 {dimension_numbers = #tpu.dot_dimension_numbers<[1], [0], [0], [1], [0, 0, 1, 1], [], []>} : vector<8x128xf32>, vector<128x512xf32>, vector<8x512xf32> -> vector<8x512xf32>
    %129 = arith.addf %127, %128 : vector<8x512xf32>
    %130 = vector.extract_strided_slice %129 {offsets = [0, 0], sizes = [8, 128], strides = [1, 1]} : vector<8x512xf32> to vector<8x128xf32>
    %131 = arith.negf %130 : vector<8x128xf32>
    %132 = math.exp %131 : vector<8x128xf32>
    %cst_46 = arith.constant 1.000000e+00 : f32
    %133 = vector.broadcast %cst_46 : f32 to vector<8x128xf32>
    %134 = arith.addf %133, %132 : vector<8x128xf32>
    %135 = arith.divf %133, %134 : vector<8x128xf32>
    %136 = vector.extract_strided_slice %129 {offsets = [0, 128], sizes = [8, 128], strides = [1, 1]} : vector<8x512xf32> to vector<8x128xf32>
    %137 = arith.negf %136 : vector<8x128xf32>
    %138 = math.exp %137 : vector<8x128xf32>
    %cst_47 = arith.constant 1.000000e+00 : f32
    %139 = vector.broadcast %cst_47 : f32 to vector<8x128xf32>
    %140 = arith.addf %139, %138 : vector<8x128xf32>
    %141 = arith.divf %139, %140 : vector<8x128xf32>
    %142 = vector.extract_strided_slice %129 {offsets = [0, 256], sizes = [8, 128], strides = [1, 1]} : vector<8x512xf32> to vector<8x128xf32>
    %143 = math.tanh %142 : vector<8x128xf32>
    %144 = vector.extract_strided_slice %129 {offsets = [0, 384], sizes = [8, 128], strides = [1, 1]} : vector<8x512xf32> to vector<8x128xf32>
    %145 = arith.negf %144 : vector<8x128xf32>
    %146 = math.exp %145 : vector<8x128xf32>
    %cst_48 = arith.constant 1.000000e+00 : f32
    %147 = vector.broadcast %cst_48 : f32 to vector<8x128xf32>
    %148 = arith.addf %147, %146 : vector<8x128xf32>
    %149 = arith.divf %147, %148 : vector<8x128xf32>
    %150 = arith.mulf %141, %114 : vector<8x128xf32>
    %151 = arith.mulf %135, %143 : vector<8x128xf32>
    %152 = arith.addf %150, %151 : vector<8x128xf32>
    %153 = math.tanh %152 : vector<8x128xf32>
    %154 = arith.mulf %149, %153 : vector<8x128xf32>
    %155 = arith.index_cast %124 : i32 to index
    %c0_49 = arith.constant 0 : index
    %c0_50 = arith.constant 0 : index
    %156 = vector.load %arg6[%155, %c0_49, %c0_50] : memref<4x8x128xf32, #tpu.memory_space<vmem>>, vector<1x8x128xf32>
    %157 = vector.shape_cast %156 : vector<1x8x128xf32> to vector<8x128xf32>
    %158 = vector.shape_cast %154 : vector<8x128xf32> to vector<1x8x128xf32>
    tpu.vector_store %arg6[%155, %c0_49, %c0_50], %158 {strides = array<i32>} : memref<4x8x128xf32, #tpu.memory_space<vmem>>, vector<1x8x128xf32>,
    %c4_i32 = arith.constant 4 : i32
    %c0_51 = arith.constant 0 : index
    %c0_52 = arith.constant 0 : index
    %159 = vector.load %arg9[%c0_51, %c0_52] : memref<8x128xf32, #tpu.memory_space<vmem>>, vector<8x128xf32>
    tpu.vector_store %arg9[%c0_51, %c0_52], %154 {strides = array<i32>} : memref<8x128xf32, #tpu.memory_space<vmem>>, vector<8x128xf32>,
    %c0_53 = arith.constant 0 : index
    %c0_54 = arith.constant 0 : index
    %160 = vector.load %arg10[%c0_53, %c0_54] : memref<8x128xf32, #tpu.memory_space<vmem>>, vector<8x128xf32>
    tpu.vector_store %arg10[%c0_53, %c0_54], %152 {strides = array<i32>} : memref<8x128xf32, #tpu.memory_space<vmem>>, vector<8x128xf32>,
    %c1_i32_55 = arith.constant 1 : i32
    %161 = arith.cmpi eq, %arg1, %c1_i32_55 : i32
    %162 = arith.extui %161 : i1 to i32
    %c0_i32_56 = arith.constant 0 : i32
    %163 = arith.cmpi ne, %162, %c0_i32_56 : i32
    scf.if %163 {
      %c0_57 = arith.constant 0 : index
      %c0_58 = arith.constant 0 : index
      %c0_59 = arith.constant 0 : index
      %164 = vector.load %arg7[%c0_57, %c0_58, %c0_59] : memref<1x8x128xf32, #tpu.memory_space<vmem>>, vector<1x8x128xf32>
      %165 = vector.shape_cast %164 : vector<1x8x128xf32> to vector<8x128xf32>
      %166 = vector.shape_cast %154 : vector<8x128xf32> to vector<1x8x128xf32>
      tpu.vector_store %arg7[%c0_57, %c0_58, %c0_59], %166 {strides = array<i32>} : memref<1x8x128xf32, #tpu.memory_space<vmem>>, vector<1x8x128xf32>,
      %c0_60 = arith.constant 0 : index
      %c0_61 = arith.constant 0 : index
      %c0_62 = arith.constant 0 : index
      %167 = vector.load %arg8[%c0_60, %c0_61, %c0_62] : memref<1x8x128xf32, #tpu.memory_space<vmem>>, vector<1x8x128xf32>
      %168 = vector.shape_cast %167 : vector<1x8x128xf32> to vector<8x128xf32>
      %169 = vector.shape_cast %152 : vector<8x128xf32> to vector<1x8x128xf32>
      tpu.vector_store %arg8[%c0_60, %c0_61, %c0_62], %169 {strides = array<i32>} : memref<1x8x128xf32, #tpu.memory_space<vmem>>, vector<1x8x128xf32>,
    } else {
    }
    return
  }
  func.func @transform_0(%arg0: i32, %arg1: i32) -> (i32, i32, i32, i32) {
    %c2_i32 = arith.constant 2 : i32
    %0 = arith.muli %c2_i32, %arg1 : i32
    %c1_i32 = arith.constant 1 : i32
    %1 = arith.subi %c1_i32, %0 : i32
    %2 = arith.muli %arg0, %1 : i32
    %3 = arith.addi %arg1, %2 : i32
    %c0_i32 = arith.constant 0 : i32
    %c0_i32_0 = arith.constant 0 : i32
    %c0_i32_1 = arith.constant 0 : i32
    return %arg0, %3, %c0_i32, %c0_i32_0 : i32, i32, i32, i32
  }
  func.func @transform_1(%arg0: i32, %arg1: i32) -> (i32, i32, i32) {
    %c0_i32 = arith.constant 0 : i32
    %c0_i32_0 = arith.constant 0 : i32
    %c0_i32_1 = arith.constant 0 : i32
    return %arg0, %c0_i32, %c0_i32_0 : i32, i32, i32
  }
  func.func @transform_2(%arg0: i32, %arg1: i32) -> (i32, i32, i32) {
    %c0_i32 = arith.constant 0 : i32
    %c0_i32_0 = arith.constant 0 : i32
    %c0_i32_1 = arith.constant 0 : i32
    return %arg0, %c0_i32, %c0_i32_0 : i32, i32, i32
  }
  func.func @transform_3(%arg0: i32, %arg1: i32) -> (i32, i32, i32) {
    %c0_i32 = arith.constant 0 : i32
    %c0_i32_0 = arith.constant 0 : i32
    %c0_i32_1 = arith.constant 0 : i32
    return %arg0, %c0_i32, %c0_i32_0 : i32, i32, i32
  }
  func.func @transform_4(%arg0: i32, %arg1: i32) -> (i32, i32, i32) {
    %c2_i32 = arith.constant 2 : i32
    %0 = arith.muli %c2_i32, %arg1 : i32
    %c1_i32 = arith.constant 1 : i32
    %1 = arith.subi %c1_i32, %0 : i32
    %2 = arith.muli %arg0, %1 : i32
    %3 = arith.addi %arg1, %2 : i32
    %c0_i32 = arith.constant 0 : i32
    %c0_i32_0 = arith.constant 0 : i32
    return %3, %c0_i32, %arg0 : i32, i32, i32
  }
  func.func @transform_5(%arg0: i32, %arg1: i32) -> (i32, i32, i32) {
    %c0_i32 = arith.constant 0 : i32
    %c0_i32_0 = arith.constant 0 : i32
    %c0_i32_1 = arith.constant 0 : i32
    return %arg0, %c0_i32, %c0_i32_0 : i32, i32, i32
  }
  func.func @transform_6(%arg0: i32, %arg1: i32) -> (i32, i32, i32) {
    %c0_i32 = arith.constant 0 : i32
    %c0_i32_0 = arith.constant 0 : i32
    %c0_i32_1 = arith.constant 0 : i32
    return %arg0, %c0_i32, %c0_i32_0 : i32, i32, i32
  }
}

</mosaic_0001>

<bundles_post_ra>
// kernel: tpu_custom_call.1
= control target key start
LH: loop header
LB: loop body
LE: loop exit
PB: predicated region body
PF: predicated region fallthrough
CT: control target
= control target key end

     0   :  { %s2938_s0 = inlined_call_operand.hbm [shape: f32[2,8,8,512], index: 0, kind: input, shape index: {}]   ;;  %s2939_s1 = inlined_call_operand.hbm [shape: f32[2,8,128], index: 1, kind: input, shape index: {}]   ;;  %s2940_s2 = inlined_call_operand.hbm [shape: f32[2,8,128], index: 2, kind: input, shape index: {}]   ;;  %s2941_s3 = inlined_call_operand.hbm [shape: f32[2,128,512], index: 3, kind: input, shape index: {}]   ;;  %s2942_s4 = inlined_call_operand.hbm [shape: f32[8,8,256], index: 4, kind: output, shape index: {0}]   ;;  %s2943_s5 = inlined_call_operand.hbm [shape: f32[2,8,128], index: 5, kind: output, shape index: {1}]   ;;  %s2944_s6 = inlined_call_operand.hbm [shape: f32[2,8,128], index: 6, kind: output, shape index: {2}]  }
   0x1   :  { %3004 = sst [smem:[#allocation64_spill]] %s2938_s0 }
   0x2   :  { %3005 = sst [smem:[#allocation65_spill]] %s2939_s1 }
   0x3   :  { %3006 = sst [smem:[#allocation66_spill]] %s2940_s2 }
   0x4   :  { %3007 = sst [smem:[#allocation67_spill]] %s2941_s3 }
   0x5   :  { %3008 = sst [smem:[#allocation68_spill]] %s2942_s4 }
   0x6   :  { %3009 = sst [smem:[#allocation69_spill]] %s2943_s5 }
   0x7   :  { %3010 = sst [smem:[#allocation70_spill]] %s2944_s6 }
   0x8   :  { %12 = vsyncpa [#allocation5], 0 }
   0x9   :  { %14 = vsyncpa [#allocation5 + $0x1], 0 }
   0xa   :  { %15 = vsyncpa [#allocation8], 0 }
   0xb   :  { %17 = vsyncpa [#allocation8 + $0x1], 0 }
   0xc   :  { %18 = vsyncpa [#allocation11], 0 }
   0xd   :  { %20 = vsyncpa [#allocation11 + $0x1], 0 }
   0xe   :  { %21 = vsyncpa [#allocation6], 0 }
   0xf   :  { %23 = vsyncpa [#allocation6 + $0x1], 0 }
  0x10   :  { %24 = vsyncpa [#allocation14], 0 }
  0x11   :  { %26 = vsyncpa [#allocation14 + $0x1], 0  ;;  %s2100_s21 = smov 0   ;;  %s2102_s22 = smov 0  }
  0x12   :  { %s2104_s23 = smov 0   ;;  %s2106_s24 = smov 0  }
  0x13   :  { %s2108_s25 = smov 0   ;;  %s2110_s26 = smov 0  }
  0x14   :  { %s2112_s27 = smov 0   ;;  %s2114_s28 = smov 0  }
  0x15   :  { %s2116_s29 = smov 0   ;;  %s2118_s30 = smov 0  }
  0x16   :  { %s2120_s7 = smov 0  }
  0x17 LB: > { %3011 = sst [smem:[#allocation21_spill]] %s2022_s22  ;;  %s2154_s8 = sadd.s32 4294967295, %s2058_s7   ;;  %s2058_s7 = sphi %s2120_s7, %s32_s7   ;;  %s2054_s30 = sphi %s2118_s30, %s3136_s30   ;;  %s2050_s29 = sphi %s2116_s29, %s3129_s29   ;;  %s2046_s28 = sphi %s2114_s28, %s3135_s28   ;;  %s2042_s27 = sphi %s2112_s27, %s3128_s27   ;;  %s2038_s26 = sphi %s2110_s26, %s3134_s26   ;;  %s2034_s25 = sphi %s2108_s25, %s3133_s25   ;;  %s2030_s24 = sphi %s2106_s24, %s3126_s24   ;;  %s2026_s23 = sphi %s2104_s23, %s3132_s23   ;;  %s2022_s22 = sphi %s2102_s22, %s3131_s22   ;;  %s2018_s21 = sphi %s2100_s21, %s3125_s21  }
  0x18   : > { %3012 = sst [smem:[#allocation22_spill]] %s2030_s24  ;;  %s2946_s9 = sadd.s32 4294967294, %s2058_s7  }
  0x19   : > { %3013 = sst [smem:[#allocation23_spill]] %s2034_s25  ;;  %p68_p0 = scmp.ne.s32.totalorder %s2038_s26, %s2034_s25 }
  0x1a   : > { %3014 = sst [smem:[#allocation24_spill]] %s2042_s27  ;;  %p69_p1 = scmp.eq.s32.totalorder %s2058_s7, 0 }
  0x1b   : > { %3015 = sst [smem:[#allocation25_spill]] %s2046_s28  ;;  %p74_p2 = scmp.ne.s32.totalorder %s2034_s25, %s2030_s24 }
  0x1c   : > { %3016 = sst [smem:[#allocation26_spill]] %s2050_s29  ;;  %p75_p3 = scmp.eq.s32.totalorder %s2154_s8, 0 }
  0x1d   : > { %3017 = sst [smem:[#allocation27_spill]] %s2058_s7  ;;  %p2166_p4 = por %p69_p1, %p68_p0 }
  0x1e   : > { %3018 = sst [smem:[#allocation28_spill]] %s2154_s8  ;;  %p2171_p5 = por %p75_p3, %p74_p2 }
  0x1f   : > { %p94_p6 = scmp.ne.s32.totalorder %s2026_s23, %s2022_s22  ;;  %p100_p7 = scmp.ne.s32.totalorder %s2022_s22, %s2018_s21 }
  0x20   : > { %s3020_s12 = scalar_select %p2171_p5, 1, 0 }
  0x21   : > { %p186_p8 = scmp.eq.s32.totalorder %s2154_s8, 3  ;;  %p2179_p9 = por %p94_p6, %p69_p1 }
  0x22   : > { %3021 = sst [smem:[#allocation29_spill]] %s3020_s12  ;;  %p192_p10 = scmp.eq.s32.totalorder %s2946_s9, 3 }
  0x23   : > { %p2185_p11 = por %p100_p7, %p75_p3  ;;  %p2192_p12 = por %p186_p8, %p68_p0 }
  0x24   : > { %p2196_p13 = por %p192_p10, %p74_p2  ;;  %p2200_p1 = por %p186_p8, %p94_p6 }
  0x25   : > { %s3023_s14 = scalar_select %p2185_p11, 1, 0 }
  0x26   : > { %s3025_s15 = scalar_select %p2192_p12, 1, 0 }
  0x27   : > { %3024 = sst [smem:[#allocation30_spill]] %s3023_s14  ;;  %p2204_p5 = por %p192_p10, %p100_p7 }
  0x28   : > { %3026 = sst [smem:[#allocation31_spill]] %s3025_s15  ;;  %p1589_p3 = scmp.lt.s32.totalorder %s2058_s7, 4 }
  0x29   : > { %s3027_s16 = scalar_select %p2196_p13, 1, 0 }
  0x2a   : > { %s3029_s17 = scalar_select %p2200_p1, 1, 0 }
  0x2b   : > { %3028 = sst [smem:[#allocation32_spill]] %s3027_s16  ;;  %s293_s19 = sand.u32 1, %s2058_s7  }
  0x2c   : > { %3030 = sst [smem:[#allocation33_spill]] %s3029_s17  ;;  %s2211_s20 = sand.u32 1, %s2026_s23  }
  0x2d   : > { %s3031_s18 = scalar_select %p2204_p5, 1, 0 }
  0x2e   : > { %p2215_p0 = pnand %p1589_p3, %p2166_p4  ;;  %s2957_s9 = sshll.u32 %s2211_s20, 3 }
  0x2f   : > { %3032 = sst [smem:[#allocation34_spill]] %s3031_s18  ;;  %s1488_s11 = sshll.u32 %s2054_s30, 3 }
  0x30   : > { %s3034_s1 = sld [smem:[#allocation65_spill]]  ;;  %s297_s15 = scalar_lea.vmem [#allocation7], %s2957_s9 }
  0x31   : > { %s305_s10 = sshll.u32 %s297_s15, 4  ;;  %p2228_p2 = pnand %p1589_p3, %p2179_p9  ;;  %s306_s10 = int_to_ptr.vmem [resolvable:$true] %s305_s10 }
  0x32   : > { %s3036_s2 = sld [smem:[#allocation66_spill]]  ;;  %p1494_p4 = scmp.ge.s32.totalorder %s2058_s7, 1 }
  0x33   : > { %p351_p6 = scmp.lt.s32.totalorder %s2058_s7, 5  ;;  %s2239_s16 = scalar_lea.sflag [#allocation8], %s293_s19 }
  0x34   : > { %s41_s15 = sadd.s32 1, %s2050_s29  ;;  %s44_s5 = sadd.s32 1, %s2054_s30 }
  0x35   : > { %p2244_p7 = pnand %p1494_p4, %p351_p6  ;;  %p42_p8 = scmp.ge.s32.totalorder %s41_s15, 2 }
  0x36   : > { %s301_s18 = scalar_lea.hbm %s3034_s1, %s1488_s11  ;;  %s61_s17 = sadd.s32 1, %s2038_s26 }
  0x37   : > { %s303_s4 = sshll.u32 %s301_s18, 4  ;;  %s3138_s15 = smov (%p42_p8, %s41_s15), 0  ;;  %s304_s4 = int_to_ptr.hbm [resolvable:$true] %s303_s4 }
  0x38   : > { %s2235_s24 = scalar_lea.hbm %s3036_s2, %s1488_s11  ;;  %s1475_s11 = sshll.u32 %s2050_s29, 1 }
  0x39   : > { %1572 = dma.hbm_to_vmem [thread:$0]  (!%p2228_p2), %s304_s4, 128, %s306_s10, %s2239_s16  }
  0x3a   : > { %s3037_s13 = scalar_select %p2244_p7, 1, 0 }
  0x3b   : > { %3039 = sst [smem:[#allocation36_spill]] %s3138_s15  ;;  %s3140_s5 = smov (!%p42_p8, %s44_s5), %s2054_s30 }
  0x3c   : > { %3038 = sst [smem:[#allocation35_spill]] %s3037_s13  ;;  %s49_s18 = ssub.s32 1, %s1475_s11 }
  0x3d   : > { %s1476_s19 = sshll.u32 %s3138_s15, 1  ;;  %p46_p9 = scmp.ge.s32.totalorder %s3140_s5, 2 }
  0x3e   : > { %s50_s4 = smul.u32 %s2054_s30, %s49_s18  ;;  %s53_s10 = ssub.s32 1, %s1476_s19 }
  0x3f   : > { %s264_s9 = sand.u32 1, %s2038_s26   ;;  %s3142_s5 = smov (%p46_p9, %s3140_s5), 0 }
  0x40   : > { %3040 = sst [smem:[#allocation37_spill]] %s3142_s5  ;;  %s51_s1 = sadd.s32 %s2050_s29, %s50_s4 }
  0x41   : > { %s54_s2 = smul.u32 %s53_s10, %s3142_s5  ;;  %s56_s7 = ssub.s32 %s2054_s30, %s3142_s5 }
  0x42   : > { %p85_p10 = scmp.eq.s32.totalorder %s56_s7, 0  ;;  %s1481_s28 = sshll.u32 %s264_s9, 7 }
  0x43   : > { %s55_s27 = sadd.s32 %s54_s2, %s3138_s15  ;;  %s1547_s14 = sshll.u32 %s51_s1, 4 }
  0x44   : > { %s57_s11 = ssub.s32 %s51_s1, %s55_s27  ;;  %s1485_s8 = sshll.u32 %s2054_s30, 5 }
  0x45   : > { %s58_s22 = sor.u32 %s57_s11, %s56_s7  ;;  %s278_s18 = sadd.s32 %s1547_s14, %s1485_s8 }
  0x46   : > { %p59_p3 = scmp.eq.s32.totalorder %s58_s22, 0  ;;  %s3041_s19 = sadd.s32 1, %s2026_s23 }
  0x47   : > { %s2269_s12 = scalar_select %p85_p10, %s2026_s23, %s3041_s19  }
  0x48   : > { %s2272_s25 = scalar_select %p59_p3, %s2038_s26, %s61_s17  }
  0x49   : > { %s1486_s13 = sshll.u32 %s278_s18, 3  ;;  %s268_s3 = scalar_lea.vmem [#allocation4], %s1481_s28 }
  0x4a   : > { %s283_s4 = sshll.u32 %s268_s3, 4  ;;  %s3042_s0 = sld [smem:[#allocation64_spill]]  ;;  %s284_s4 = int_to_ptr.vmem [resolvable:$true] %s283_s4 }
  0x4b   : > { %s265_s1 = scalar_lea.sflag [#allocation5], %s264_s9  ;;  %p1782_p6 = pneg %p2215_p0 }
  0x50   : > { %s280_s29 = scalar_lea.hbm %s3042_s0, %s1486_s13  ;;  %s1785_s3 = scalar_lea.hbm %s3042_s0, 512 }
  0x51   : > { %s281_s2 = sshll.u32 %s280_s29, 4  ;;  %s282_s2 = int_to_ptr.hbm [resolvable:$true] %s281_s2 }
  0x52   : > { %s1778_s27 = sshra.s32 %s282_s2, 4  ;;  %s1779_s27 = int_to_ptr.hbm [resolvable:$true] %s1778_s27 }
  0x53   : > { %s1780_s22 = scalar_lea.hbm %s1779_s27, 128  ;;  %p1786_p10 = scmp.lt.s32.totalorder %s1779_s27, %s3042_s0 }
  0x54   : > { %p1781_p4 = scmp.ne.s32.totalorder %s1779_s27, %s1780_s22  ;;  %p1787_p3 = scmp.lt.s32.totalorder %s1785_s3, %s1780_s22 }
  0x56   : > { %p1783_p8 = pnand %p1782_p6, %p1781_p4  ;;  %p1788_p5 = por %p1787_p3, %p1786_p10 }
  0x58   : > { %p1784_p9 = pneg %p1783_p8 }
  0x5a   : > { %p1789_p13 = pnand %p1788_p5, %p1784_p9 }
  0x5c   : > { %1792 = shalt.err (!%p1789_p13)
}
  0x5d   : > { %s2060_s29 = smov 512   ;;  %s2061_s9 = smov 32  }
  0x5e   : > { %1569 = dma.hbm_to_vmem [thread:$0]  (!%p2215_p0), %s282_s2, 2048, %s284_s4, %s265_s1, %s2060_s29, %s2060_s29, %s2061_s9  }
  0x5f   : > { %s322_s13 = sshll.u32 %s2235_s24, 4  ;;  %s3043_s5 = sshll.u32 %s2211_s20, 3  ;;  %s323_s13 = int_to_ptr.hbm [resolvable:$true] %s322_s13 }
  0x60   : > { %s316_s17 = scalar_lea.vmem [#allocation9], %s3043_s5  ;;  %s1491_s18 = sshll.u32 %s2211_s20, 9 }
  0x61   : > { %s324_s11 = sshll.u32 %s316_s17, 4  ;;  %s1548_s19 = sshll.u32 %s2054_s30, 9  ;;  %s325_s11 = int_to_ptr.vmem [resolvable:$true] %s324_s11 }
  0x62   : > { %1575 = dma.hbm_to_vmem [thread:$0]  (!%p2228_p2), %s323_s13, 128, %s325_s11, %s2239_s16  }
  0x63   : > { %s3044_s22 = sld [smem:[#allocation67_spill]]  ;;  %s335_s8 = scalar_lea.vmem [#allocation10], %s1491_s18 }
  0x64   : > { %s343_s3 = sshll.u32 %s335_s8, 4  ;;  %s332_s4 = scalar_lea.sflag [#allocation11], %s2211_s20  ;;  %s344_s3 = int_to_ptr.vmem [resolvable:$true] %s343_s3 }
  0x67   : > { %355 = sbr.rel (%p2244_p7) target bundleno = 927 (0x39f), region = 36 }
  0x69   : > { %s340_s7 = scalar_lea.hbm %s3044_s22, %s1548_s19 }
  0x6a   : > { %s341_s21 = sshll.u32 %s340_s7, 4  ;;  %s342_s21 = int_to_ptr.hbm [resolvable:$true] %s341_s21 }
  0x6b   : > { %1578 = dma.hbm_to_vmem [thread:$0]  (!%p2228_p2), %s342_s21, 8192, %s344_s3, %s332_s4, %s2060_s29, %s2060_s29, %s2061_s9  }
  0x6c   : > { %s3046_s2 = sld [smem:[#allocation23_spill]] }
  0x6d   : > { %s3047_s1 = sld [smem:[#allocation29_spill]] }
  0x72   : > { %s2304_s16 = sand.u32 1, %s3046_s2  }
  0x73   : > { %s1495_s28 = sshll.u32 %s2304_s16, 7  ;;  %s358_s14 = scalar_lea.sflag [#allocation5], %s2304_s16 }
  0x74   : > { %s2308_s13 = scalar_lea.vmem [#allocation4], %s1495_s28  ;;  %p3048_p5 = scmp.ne.s32.totalorder %s3047_s1, 0 }
  0x76   : > { %1997 = dma.done.wait (%p3048_p5), %s358_s14, 2048  }
  0x77   : > { %1999 = vsyncadd (%p3048_p5), %s358_s14, 4294965248  ;;  %s3049_s6 = sld [smem:[#allocation28_spill]] }
  0x78   : > { %s3050_s20 = sld [smem:[#allocation21_spill]] }
  0x7d   : > { %s367_s9 = sand.u32 1, %s3049_s6  }
  0x7e   : > { %s369_s5 = sand.u32 1, %s3050_s20   ;;  %s368_s11 = scalar_lea.sflag [#allocation8], %s367_s9 }
  0x7f   : > { %s2316_s17 = sshll.u32 %s369_s5, 3 }
  0x80   : > { %s371_s18 = scalar_lea.vmem [#allocation7], %s2316_s17 }
  0x81   : > { %2001 = dma.done.wait (%p2185_p11), %s368_s11, 256  }
  0x82   : > { %2003 = vsyncadd (%p2185_p11), %s368_s11, 4294967040  ;;  %s1498_s19 = sshll.u32 %s369_s5, 9  ;;  %s381_s10 = scalar_lea.vmem [#allocation9], %s2316_s17 }
  0x83   : > { %s388_s27 = scalar_lea.sflag [#allocation11], %s369_s5  ;;  %s2326_s22 = scalar_lea.vmem [#allocation10], %s1498_s19 }
  0x84   : > { %2005 = dma.done.wait (%p2185_p11), %s388_s27, 8192  }
  0x85   : > { %2007 = vsyncadd (%p2185_p11), %s388_s27, 4294959104  ;;  %s1499_s7 = sshll.u32 %s2304_s16, 5  ;;  %s438_s3 = scalar_lea.vmem [#allocation13], %s2316_s17 }
  0x86   : > { %s2333_s8 = scalar_lea.vmem [#allocation12], %s1499_s7  ;;  %s3001_s21 = scalar_lea.vmem [#allocation15], %s2316_s17 }
  0x87   : > { %s3052_s4 = sld [smem:[#allocation24_spill]] }
  0x8d   : > { %p1502_p13 = scmp.ne.s32.totalorder %s3052_s4, 0 }
  0x8f   : > { %459 = sbr.rel (%p1502_p13) target bundleno = 151 (0x97), region = 56 }
  0x94   : > { %v460_v0 = vld [vmem:[%s371_s18] sm:$0xff]  ;;  %v462_v1 = vld [vmem:[%s381_s10] sm:$0xff] }
  0x95   : > { %461 = vst [vmem:[#allocation2] sm:$0xff] %v460_v0 }
  0x96   : > { %463 = vst [vmem:[#allocation3] sm:$0xff] %v462_v1 }
  0x97 PF: > { %v2339_v2 = vld [vmem:[%s2326_s22 + $0x1e0] sm:$0xff]  ;;  %v2342_v3 = vld [vmem:[%s2326_s22 + $0x1e8] sm:$0xff]  ;;  %v2345_v4 = vld [vmem:[%s2326_s22 + $0x1f8] sm:$0xff]  ;;  %s3080_s24 = sld [smem:[#allocation25_spill]] }
  0x98   : > { %3053 = vst [vmem:[#allocation38_spill] sm:$0xff] %v2339_v2  ;;  %538 = vmatpush.msra.mxu0 %v2339_v2  ;;  %558 = vmatpush.msra.mxu1 %v2342_v3  ;;  %v2350_v5 = vld [vmem:[%s2326_s22 + $0x1c0] sm:$0xff]  ;;  %v2353_v6 = vld [vmem:[%s2326_s22 + $0x1c8] sm:$0xff]  ;;  %v2356_v7 = vld [vmem:[%s2326_s22 + $0x1d8] sm:$0xff] }
  0x99   : > { %598 = vmatpush.msra.mxu3 %v2345_v4  ;;  %v2360_v8 = vld [vmem:[%s2326_s22 + $0x1a0] sm:$0xff]  ;;  %v2363_v9 = vld [vmem:[%s2326_s22 + $0x1a8] sm:$0xff]  ;;  %v2368_v10 = vld [vmem:[%s2326_s22 + $0x1b8] sm:$0xff] }
  0x9a   : > { %539 = vmatpush.msra.mxu0 %v2350_v5  ;;  %559 = vmatpush.msra.mxu1 %v2353_v6  ;;  %v2372_v11 = vld [vmem:[%s2326_s22 + $0x180] sm:$0xff]  ;;  %v2375_v12 = vld [vmem:[%s2326_s22 + $0x188] sm:$0xff]  ;;  %v2380_v13 = vld [vmem:[%s2326_s22 + $0x198] sm:$0xff] }
  0x9b   : > { %599 = vmatpush.msra.mxu3 %v2356_v7  ;;  %v2384_v14 = vld [vmem:[%s2326_s22 + $0x160] sm:$0xff]  ;;  %v2387_v15 = vld [vmem:[%s2326_s22 + $0x168] sm:$0xff]  ;;  %v2392_v16 = vld [vmem:[%s2326_s22 + $0x178] sm:$0xff] }
  0x9c   : > { %540 = vmatpush.msra.mxu0 %v2360_v8  ;;  %560 = vmatpush.msra.mxu1 %v2363_v9  ;;  %v2396_v17 = vld [vmem:[%s2326_s22 + $0x140] sm:$0xff]  ;;  %v2399_v18 = vld [vmem:[%s2326_s22 + $0x148] sm:$0xff]  ;;  %v2402_v19 = vld [vmem:[%s2326_s22 + $0x1f0] sm:$0xff] }
  0x9d   : > { %600 = vmatpush.msra.mxu3 %v2368_v10  ;;  %v2407_v20 = vld [vmem:[%s2326_s22 + $0x158] sm:$0xff]  ;;  %v2410_v21 = vld [vmem:[%s2326_s22 + $0x1d0] sm:$0xff]  ;;  %v2414_v22 = vld [vmem:[%s2326_s22 + $0x120] sm:$0xff]  ;;  %578 = vmatpush.msra.mxu2 %v2402_v19  ;;  %s1549_s2 = smul.u32 96, %s3080_s24  ;;  %s1509_s6 = sshll.u32 %s3080_s24, 5 }
  0x9e   : > { %541 = vmatpush.msra.mxu0 %v2372_v11  ;;  %561 = vmatpush.msra.mxu1 %v2375_v12  ;;  %v2417_v23 = vld [vmem:[%s2326_s22 + $0x128] sm:$0xff]  ;;  %v2423_v24 = vld [vmem:[%s2326_s22 + $0x138] sm:$0xff]  ;;  %v2426_v25 = vld [vmem:[%s2326_s22 + $0x1b0] sm:$0xff]  ;;  %s1508_s28 = smul.u32 24, %s3080_s24  ;;  %s1349_s20 = scalar_lea.vmem %s2308_s13, %s1509_s6 [#allocation4] }
  0x9f   : > { %601 = vmatpush.msra.mxu3 %v2380_v13  ;;  %v2430_v26 = vld [vmem:[%s2326_s22 + $0x100] sm:$0xff]  ;;  %v2433_v27 = vld [vmem:[%s2326_s22 + $0x108] sm:$0xff]  ;;  %579 = vmatpush.msra.mxu2 %v2410_v21  ;;  %v2439_v28 = vld [vmem:[%s2326_s22 + $0x118] sm:$0xff]  ;;  %s533_s1 = scalar_lea.vmem %s2308_s13, %s1549_s2 [#allocation4]  ;;  %s2800_s29 = sshll.u32 %s3080_s24, 3 }
  0xa0   : > { %542 = vmatpush.msra.mxu0 %v2384_v14  ;;  %562 = vmatpush.msra.mxu1 %v2387_v15  ;;  %v2442_v29 = vld [vmem:[%s2326_s22 + $0x190] sm:$0xff]  ;;  %v2446_v30 = vld [vmem:[%s2326_s22 + $0xe0] sm:$0xff]  ;;  %v2449_v31 = vld [vmem:[%s2326_s22 + $0xe8] sm:$0xff]  ;;  %s686_s14 = scalar_lea.vmem %s2333_s8, %s1508_s28 [#allocation12]  ;;  %s1352_s5 = scalar_lea.vmem %s2333_s8, %s2800_s29 [#allocation12] }
  0xa1   : > { %602 = vmatpush.msra.mxu3 %v2392_v16  ;;  %580 = vmatpush.msra.mxu2 %v2426_v25  ;;  %v2455_v32 = vld [vmem:[%s2326_s22 + $0xf8] sm:$0xff]  ;;  %v2458_v33 = vld [vmem:[%s2326_s22 + $0x170] sm:$0xff]  ;;  %v2462_v34 = vld [vmem:[%s2326_s22 + $0xc0] sm:$0xff]  ;;  %s846_s11 = ssub.s32 2, %s3080_s24  ;;  %s3106_s2 = sld [smem:[#allocation24_spill]] }
  0xa2   : > { %543 = vmatpush.msra.mxu0 %v2396_v17  ;;  %563 = vmatpush.msra.mxu1 %v2399_v18  ;;  %v2465_v35 = vld [vmem:[%s2326_s22 + $0xc8] sm:$0xff]  ;;  %v2471_v36 = vld [vmem:[%s2326_s22 + $0xd8] sm:$0xff]  ;;  %v2474_v37 = vld [vmem:[%s2326_s22 + $0x150] sm:$0xff]  ;;  %s1550_s18 = sshll.u32 %s846_s11, 5  ;;  %s1524_s10 = sshll.u32 %s846_s11, 3 }
  0xa3   : > { %603 = vmatpush.msra.mxu3 %v2407_v20  ;;  %581 = vmatpush.msra.mxu2 %v2442_v29  ;;  %3054 = vst [vmem:[#allocation39_spill] sm:$0xff] %v2471_v36  ;;  %v2478_v38 = vld [vmem:[%s2326_s22 + $0xa0] sm:$0xff]  ;;  %v2481_v39 = vld [vmem:[%s2326_s22 + $0xa8] sm:$0xff]  ;;  %v2487_v40 = vld [vmem:[%s2326_s22 + $0xb8] sm:$0xff]  ;;  %s849_s19 = scalar_lea.vmem %s2308_s13, %s1550_s18 [#allocation4]  ;;  %s1002_s27 = scalar_lea.vmem %s2333_s8, %s1524_s10 [#allocation12] }
  0xa4   : > { %544 = vmatpush.msra.mxu0 %v2414_v22  ;;  %564 = vmatpush.msra.mxu1 %v2417_v23  ;;  %3055 = vst [vmem:[#allocation40_spill] sm:$0xff] %v2478_v38  ;;  %v2490_v41 = vld [vmem:[%s2326_s22 + $0x130] sm:$0xff]  ;;  %v2494_v42 = vld [vmem:[%s2326_s22 + $0x80] sm:$0xff]  ;;  %v2497_v43 = vld [vmem:[%s2326_s22 + $0x88] sm:$0xff] }
  0xa5   : > { %604 = vmatpush.msra.mxu3 %v2423_v24  ;;  %3056 = vst [vmem:[#allocation41_spill] sm:$0xff] %v2481_v39  ;;  %582 = vmatpush.msra.mxu2 %v2458_v33  ;;  %v2503_v44 = vld [vmem:[%s2326_s22 + $0x98] sm:$0xff]  ;;  %v2506_v45 = vld [vmem:[%s2326_s22 + $0x110] sm:$0xff]  ;;  %v2510_v46 = vld [vmem:[%s2326_s22 + $0x60] sm:$0xff] }
  0xa6   : > { %545 = vmatpush.msra.mxu0 %v2430_v26  ;;  %565 = vmatpush.msra.mxu1 %v2433_v27  ;;  %3057 = vst [vmem:[#allocation42_spill] sm:$0xff] %v2487_v40  ;;  %v2513_v47 = vld [vmem:[%s2326_s22 + $0x68] sm:$0xff]  ;;  %v2519_v48 = vld [vmem:[%s2326_s22 + $0x78] sm:$0xff]  ;;  %v2522_v49 = vld [vmem:[%s2326_s22 + $0xf0] sm:$0xff] }
  0xa7   : > { %605 = vmatpush.msra.mxu3 %v2439_v28  ;;  %3058 = vst [vmem:[#allocation43_spill] sm:$0xff] %v2494_v42  ;;  %583 = vmatpush.msra.mxu2 %v2474_v37  ;;  %v2526_v50 = vld [vmem:[%s2326_s22 + $0x40] sm:$0xff]  ;;  %v2529_v51 = vld [vmem:[%s2326_s22 + $0x48] sm:$0xff]  ;;  %v2535_v52 = vld [vmem:[%s2326_s22 + $0x58] sm:$0xff]  ;;  %p1535_p11 = scmp.ne.s32.totalorder %s3106_s2, 1 }
  0xa8   : > { %546 = vmatpush.msra.mxu0 %v2446_v30  ;;  %566 = vmatpush.msra.mxu1 %v2449_v31  ;;  %3059 = vst [vmem:[#allocation44_spill] sm:$0xff] %v2497_v43  ;;  %v2538_v53 = vld [vmem:[%s2326_s22 + $0xd0] sm:$0xff]  ;;  %v2542_v54 = vld [vmem:[%s2326_s22 + $0x20] sm:$0xff]  ;;  %v2545_v55 = vld [vmem:[%s2326_s22 + $0x28] sm:$0xff] }
  0xa9   : > { %606 = vmatpush.msra.mxu3 %v2455_v32  ;;  %3060 = vst [vmem:[#allocation45_spill] sm:$0xff] %v2503_v44  ;;  %584 = vmatpush.msra.mxu2 %v2490_v41  ;;  %v2551_v56 = vld [vmem:[%s2326_s22 + $0x38] sm:$0xff]  ;;  %v2554_v57 = vld [vmem:[%s2326_s22 + $0xb0] sm:$0xff]  ;;  %v2558_v58 = vld [vmem:[%s2326_s22] sm:$0xff] }
  0xaa   : > { %547 = vmatpush.msra.mxu0 %v2462_v34  ;;  %567 = vmatpush.msra.mxu1 %v2465_v35  ;;  %3061 = vst [vmem:[#allocation46_spill] sm:$0xff] %v2510_v46  ;;  %v2561_v59 = vld [vmem:[%s2326_s22 + $0x8] sm:$0xff]  ;;  %v2567_v60 = vld [vmem:[%s2326_s22 + $0x18] sm:$0xff]  ;;  %v528_v61 = vld [vmem:[#allocation2] sm:$0xff] }
  0xab   : > { %607 = vmatpush.msra.mxu3 %v2471_v36  ;;  %3062 = vst [vmem:[#allocation47_spill] sm:$0xff] %v2513_v47  ;;  %585 = vmatpush.msra.mxu2 %v2506_v45  ;;  %v2574_v62 = vld [vmem:[%s2326_s22 + $0x90] sm:$0xff] }
  0xac   : > { %548 = vmatpush.msra.mxu0 %v2478_v38  ;;  %568 = vmatpush.msra.mxu1 %v2481_v39  ;;  %3063 = vst [vmem:[#allocation48_spill] sm:$0xff] %v2519_v48  ;;  %v2578_v63 = vld [vmem:[%s2326_s22 + $0x70] sm:$0xff] }
  0xad   : > { %608 = vmatpush.msra.mxu3 %v2487_v40  ;;  %3064 = vst [vmem:[#allocation49_spill] sm:$0xff] %v2526_v50  ;;  %586 = vmatpush.msra.mxu2 %v2522_v49  ;;  %v2583_v0 = vld [vmem:[%s2326_s22 + $0x50] sm:$0xff] }
  0xae   : > { %549 = vmatpush.msra.mxu0 %v2494_v42  ;;  %569 = vmatpush.msra.mxu1 %v2497_v43  ;;  %3065 = vst [vmem:[#allocation50_spill] sm:$0xff] %v2529_v51  ;;  %v2590_v1 = vld [vmem:[%s2326_s22 + $0x30] sm:$0xff] }
  0xaf   : > { %609 = vmatpush.msra.mxu3 %v2503_v44  ;;  %3066 = vst [vmem:[#allocation51_spill] sm:$0xff] %v2535_v52  ;;  %587 = vmatpush.msra.mxu2 %v2538_v53 }
  0xb0   : > { %550 = vmatpush.msra.mxu0 %v2510_v46  ;;  %570 = vmatpush.msra.mxu1 %v2513_v47  ;;  %3067 = vst [vmem:[#allocation52_spill] sm:$0xff] %v2542_v54 }
  0xb1   : > { %610 = vmatpush.msra.mxu3 %v2519_v48  ;;  %3068 = vst [vmem:[#allocation53_spill] sm:$0xff] %v2545_v55  ;;  %588 = vmatpush.msra.mxu2 %v2554_v57 }
  0xb2   : > { %551 = vmatpush.msra.mxu0 %v2526_v50  ;;  %571 = vmatpush.msra.mxu1 %v2529_v51  ;;  %3069 = vst [vmem:[#allocation54_spill] sm:$0xff] %v2551_v56 }
  0xb3   : > { %3070 = vst [vmem:[#allocation55_spill] sm:$0xff] %v2554_v57  ;;  %611 = vmatpush.msra.mxu3 %v2535_v52  ;;  %589 = vmatpush.msra.mxu2 %v2574_v62 }
  0xb4   : > { %3071 = vst [vmem:[#allocation56_spill] sm:$0xff] %v2558_v58  ;;  %552 = vmatpush.msra.mxu0 %v2542_v54  ;;  %572 = vmatpush.msra.mxu1 %v2545_v55 }
  0xb5   : > { %3072 = vst [vmem:[#allocation57_spill] sm:$0xff] %v2561_v59  ;;  %612 = vmatpush.msra.mxu3 %v2551_v56  ;;  %590 = vmatpush.msra.mxu2 %v2578_v63 }
  0xb6   : > { %3073 = vst [vmem:[#allocation58_spill] sm:$0xff] %v2567_v60  ;;  %553 = vmatpush.msra.mxu0 %v2558_v58  ;;  %573 = vmatpush.msra.mxu1 %v2561_v59 }
  0xb7   : > { %3074 = vst [vmem:[#allocation59_spill] sm:$0xff] %v2574_v62  ;;  %613 = vmatpush.msra.mxu3 %v2567_v60  ;;  %554 = vmatmul.f32.vlgmr.msra.gmra.mxu0 %v528_v61 }
  0xb8   : > { %574 = vmatmul.f32.vlgmr.msra.gmra.mxu1 %v528_v61  ;;  %614 = vmatmul.f32.vlgmr.msra.gmra.mxu3 %v528_v61  ;;  %3075 = vst [vmem:[#allocation60_spill] sm:$0xff] %v2578_v63 }
  0xb9   : > { %696 = vmatpush.msrb.mxu0 %v2339_v2  ;;  %3076 = vst [vmem:[#allocation61_spill] sm:$0xff] %v2583_v0  ;;  %716 = vmatpush.msrb.mxu1 %v2342_v3  ;;  %v2597_v2 = vld [vmem:[%s2326_s22 + $0x10] sm:$0xff]  ;;  %s1525_s22 = smul.u32 4294967200, %s3080_s24 }
  0xba   : > { %756 = vmatpush.msrb.mxu3 %v2345_v4  ;;  %3077 = vst [vmem:[#allocation62_spill] sm:$0xff] %v2590_v1  ;;  %591 = vmatpush.msra.mxu2 %v2583_v0 }
  0xbb   : > { %697 = vmatpush.msrb.mxu0 %v2350_v5  ;;  %717 = vmatpush.msrb.mxu1 %v2353_v6  ;;  %3078 = vst [vmem:[#allocation63_spill] sm:$0xff] %v2597_v2  ;;  %s1360_s7 = scalar_lea.vmem %s2308_s13, %s1525_s22 [#allocation4]  ;;  %s1533_s13 = smul.u32 4294967272, %s3080_s24 }
  0xbc   : > { %757 = vmatpush.msrb.mxu3 %v2356_v7  ;;  %592 = vmatpush.msra.mxu2 %v2590_v1 }
  0xbd   : > { %698 = vmatpush.msrb.mxu0 %v2360_v8  ;;  %718 = vmatpush.msrb.mxu1 %v2363_v9  ;;  %s1364_s4 = scalar_lea.vmem %s2333_s8, %s1533_s13 [#allocation12] }
  0xbe   : > { %758 = vmatpush.msrb.mxu3 %v2368_v10  ;;  %593 = vmatpush.msra.mxu2 %v2597_v2 }
  0xbf   : > { %699 = vmatpush.msrb.mxu0 %v2372_v11  ;;  %719 = vmatpush.msrb.mxu1 %v2375_v12 }
  0xc0   : > { %759 = vmatpush.msrb.mxu3 %v2380_v13  ;;  %594 = vmatmul.f32.vlgmr.msra.gmra.mxu2 %v528_v61  ;;  %v3079_v61 = vld [vmem:[#allocation38_spill] sm:$0xff] }
  0xc1   : > { %700 = vmatpush.msrb.mxu0 %v2384_v14  ;;  %720 = vmatpush.msrb.mxu1 %v2387_v15 }
  0xc2   : > { %736 = vmatpush.msrb.mxu2 %v2402_v19  ;;  %760 = vmatpush.msrb.mxu3 %v2392_v16 }
  0xc3   : > { %701 = vmatpush.msrb.mxu0 %v2396_v17  ;;  %721 = vmatpush.msrb.mxu1 %v2399_v18 }
  0xc4   : > { %737 = vmatpush.msrb.mxu2 %v2410_v21  ;;  %761 = vmatpush.msrb.mxu3 %v2407_v20 }
  0xc5   : > { %702 = vmatpush.msrb.mxu0 %v2414_v22  ;;  %722 = vmatpush.msrb.mxu1 %v2417_v23 }
  0xc6   : > { %738 = vmatpush.msrb.mxu2 %v2426_v25  ;;  %762 = vmatpush.msrb.mxu3 %v2423_v24 }
  0xc7   : > { %703 = vmatpush.msrb.mxu0 %v2430_v26  ;;  %723 = vmatpush.msrb.mxu1 %v2433_v27 }
  0xc8   : > { %739 = vmatpush.msrb.mxu2 %v2442_v29  ;;  %763 = vmatpush.msrb.mxu3 %v2439_v28 }
  0xc9   : > { %704 = vmatpush.msrb.mxu0 %v2446_v30  ;;  %724 = vmatpush.msrb.mxu1 %v2449_v31 }
  0xca   : > { %740 = vmatpush.msrb.mxu2 %v2458_v33  ;;  %764 = vmatpush.msrb.mxu3 %v2455_v32 }
  0xcb   : > { %705 = vmatpush.msrb.mxu0 %v2462_v34  ;;  %725 = vmatpush.msrb.mxu1 %v2465_v35 }
  0xcc   : > { %741 = vmatpush.msrb.mxu2 %v2474_v37  ;;  %765 = vmatpush.msrb.mxu3 %v2471_v36 }
  0xcd   : > { %706 = vmatpush.msrb.mxu0 %v2478_v38  ;;  %726 = vmatpush.msrb.mxu1 %v2481_v39 }
  0xce   : > { %742 = vmatpush.msrb.mxu2 %v2490_v41  ;;  %766 = vmatpush.msrb.mxu3 %v2487_v40 }
  0xcf   : > { %707 = vmatpush.msrb.mxu0 %v2494_v42  ;;  %727 = vmatpush.msrb.mxu1 %v2497_v43 }
  0xd0   : > { %743 = vmatpush.msrb.mxu2 %v2506_v45  ;;  %767 = vmatpush.msrb.mxu3 %v2503_v44 }
  0xd1   : > { %708 = vmatpush.msrb.mxu0 %v2510_v46  ;;  %728 = vmatpush.msrb.mxu1 %v2513_v47 }
  0xd2   : > { %744 = vmatpush.msrb.mxu2 %v2522_v49  ;;  %768 = vmatpush.msrb.mxu3 %v2519_v48 }
  0xd3   : > { %709 = vmatpush.msrb.mxu0 %v2526_v50  ;;  %729 = vmatpush.msrb.mxu1 %v2529_v51 }
  0xd4   : > { %745 = vmatpush.msrb.mxu2 %v2538_v53  ;;  %769 = vmatpush.msrb.mxu3 %v2535_v52 }
  0xd5   : > { %710 = vmatpush.msrb.mxu0 %v2542_v54  ;;  %730 = vmatpush.msrb.mxu1 %v2545_v55 }
  0xd6   : > { %746 = vmatpush.msrb.mxu2 %v2554_v57  ;;  %770 = vmatpush.msrb.mxu3 %v2551_v56 }
  0xd7   : > { %711 = vmatpush.msrb.mxu0 %v2558_v58  ;;  %731 = vmatpush.msrb.mxu1 %v2561_v59 }
  0xd8   : > { %747 = vmatpush.msrb.mxu2 %v2574_v62  ;;  %771 = vmatpush.msrb.mxu3 %v2567_v60 }
  0xd9   : > { %854 = vmatpush.msra.mxu0 %v3079_v61  ;;  %874 = vmatpush.msra.mxu1 %v2342_v3 }
  0xda   : > { %748 = vmatpush.msrb.mxu2 %v2578_v63  ;;  %914 = vmatpush.msra.mxu3 %v2345_v4 }
  0xdb   : > { %855 = vmatpush.msra.mxu0 %v2350_v5  ;;  %875 = vmatpush.msra.mxu1 %v2353_v6 }
  0xdc   : > { %749 = vmatpush.msrb.mxu2 %v2583_v0  ;;  %915 = vmatpush.msra.mxu3 %v2356_v7 }
  0xdd   : > { %856 = vmatpush.msra.mxu0 %v2360_v8  ;;  %876 = vmatpush.msra.mxu1 %v2363_v9 }
  0xde   : > { %750 = vmatpush.msrb.mxu2 %v2590_v1  ;;  %916 = vmatpush.msra.mxu3 %v2368_v10 }
  0xdf   : > { %857 = vmatpush.msra.mxu0 %v2372_v11  ;;  %877 = vmatpush.msra.mxu1 %v2375_v12 }
  0xe0   : > { %751 = vmatpush.msrb.mxu2 %v2597_v2  ;;  %917 = vmatpush.msra.mxu3 %v2380_v13 }
  0xe1   : > { %858 = vmatpush.msra.mxu0 %v2384_v14  ;;  %878 = vmatpush.msra.mxu1 %v2387_v15 }
  0xe2   : > { %894 = vmatpush.msra.mxu2 %v2402_v19  ;;  %918 = vmatpush.msra.mxu3 %v2392_v16 }
  0xe3   : > { %859 = vmatpush.msra.mxu0 %v2396_v17  ;;  %879 = vmatpush.msra.mxu1 %v2399_v18 }
  0xe4   : > { %895 = vmatpush.msra.mxu2 %v2410_v21  ;;  %919 = vmatpush.msra.mxu3 %v2407_v20 }
  0xe5   : > { %860 = vmatpush.msra.mxu0 %v2414_v22  ;;  %880 = vmatpush.msra.mxu1 %v2417_v23 }
  0xe6   : > { %896 = vmatpush.msra.mxu2 %v2426_v25  ;;  %920 = vmatpush.msra.mxu3 %v2423_v24 }
  0xe7   : > { %861 = vmatpush.msra.mxu0 %v2430_v26  ;;  %881 = vmatpush.msra.mxu1 %v2433_v27 }
  0xe8   : > { %897 = vmatpush.msra.mxu2 %v2442_v29  ;;  %921 = vmatpush.msra.mxu3 %v2439_v28 }
  0xe9   : > { %862 = vmatpush.msra.mxu0 %v2446_v30  ;;  %882 = vmatpush.msra.mxu1 %v2449_v31 }
  0xea   : > { %898 = vmatpush.msra.mxu2 %v2458_v33  ;;  %922 = vmatpush.msra.mxu3 %v2455_v32 }
  0xeb   : > { %863 = vmatpush.msra.mxu0 %v2462_v34  ;;  %883 = vmatpush.msra.mxu1 %v2465_v35 }
  0xec   : > { %899 = vmatpush.msra.mxu2 %v2474_v37  ;;  %923 = vmatpush.msra.mxu3 %v2471_v36 }
  0xed   : > { %864 = vmatpush.msra.mxu0 %v2478_v38  ;;  %884 = vmatpush.msra.mxu1 %v2481_v39 }
  0xee   : > { %900 = vmatpush.msra.mxu2 %v2490_v41  ;;  %924 = vmatpush.msra.mxu3 %v2487_v40 }
  0xef   : > { %865 = vmatpush.msra.mxu0 %v2494_v42  ;;  %885 = vmatpush.msra.mxu1 %v2497_v43 }
  0xf0   : > { %901 = vmatpush.msra.mxu2 %v2506_v45  ;;  %925 = vmatpush.msra.mxu3 %v2503_v44  ;;  %v536_v44 = vld [vmem:[%s533_s1 + $0x10] sm:$0xff] }
  0xf1   : > { %866 = vmatpush.msra.mxu0 %v2510_v46  ;;  %886 = vmatpush.msra.mxu1 %v2513_v47 }
  0xf2   : > { %902 = vmatpush.msra.mxu2 %v2522_v49  ;;  %926 = vmatpush.msra.mxu3 %v2519_v48 }
  0xf3   : > { %867 = vmatpush.msra.mxu0 %v2526_v50  ;;  %887 = vmatpush.msra.mxu1 %v2529_v51 }
  0xf4   : > { %903 = vmatpush.msra.mxu2 %v2538_v53  ;;  %927 = vmatpush.msra.mxu3 %v2535_v52 }
  0xf5   : > { %868 = vmatpush.msra.mxu0 %v2542_v54  ;;  %888 = vmatpush.msra.mxu1 %v2545_v55  ;;  %v534_v55 = vld [vmem:[%s533_s1] sm:$0xff] }
  0xf6   : > { %904 = vmatpush.msra.mxu2 %v2554_v57  ;;  %928 = vmatpush.msra.mxu3 %v2551_v56  ;;  %v535_v56 = vld [vmem:[%s533_s1 + $0x8] sm:$0xff] }
  0xf7   : > { %869 = vmatpush.msra.mxu0 %v2558_v58  ;;  %889 = vmatpush.msra.mxu1 %v2561_v59 }
  0xf8   : > { %905 = vmatpush.msra.mxu2 %v2574_v62  ;;  %929 = vmatpush.msra.mxu3 %v2567_v60  ;;  %v537_v60 = vld [vmem:[%s533_s1 + $0x18] sm:$0xff] }
  0xfa   : > { %906 = vmatpush.msra.mxu2 %v2578_v63 }
  0xfc   : > { %907 = vmatpush.msra.mxu2 %v2583_v0 }
  0xfe   : > { %908 = vmatpush.msra.mxu2 %v2590_v1 }
 0x100   : > { %909 = vmatpush.msra.mxu2 %v2597_v2 }
 0x134   : > { %v555_v54 = vpop.f32.mrf.mxu0 }
 0x135   : > { %v618_v52 = vadd.f32 %v555_v54, %v534_v55  ;;  %v575_v51 = vpop.f32.mrf.mxu1 }
 0x136   : > { %v619_v58 = vadd.f32 %v575_v51, %v535_v56 }
 0x137   : > { %v1505_v50 = vmul.f32 -1.442695, %v618_v52 }
 0x138   : > { %v1506_v59 = vmul.f32 -1.442695, %v619_v58 }
 0x139   : > { %1684 = vpow2.f32 %v1505_v50 }
 0x13a   : > { %1686 = vpow2.f32 %v1506_v59 }
 0x13b   : > { %v615_v48 = vpop.f32.mrf.mxu3 }
 0x13c   : > { %v621_v63 = vadd.f32 %v615_v48, %v537_v60 }
 0x13e   : > { %v1507_v0 = vmul.f32 -1.442695, %v621_v63 }
 0x13f   : > { %v1685_v47 = vpop.eup %1684 }
 0x140   : > { %v1687_v1 = vpop.eup %1686  ;;  %v625_v46 = vadd.f32 1.0, %v1685_v47  ;;  %1688 = vpow2.f32 %v1507_v0 }
 0x141   : > { %v644_v2 = vadd.f32 1.0, %v1687_v1 }
 0x142   : > { %1690 = vrcp.f32 %v625_v46  ;;  %v637_v60 = vand.u32 2147483648, %v625_v46  ;;  %v635_v0 = vand.u32 2147483647, %v625_v46  ;;  %vm631_vm2 = vweird.f32 %v625_v46 }
 0x143   : > { %1692 = vrcp.f32 %v644_v2  ;;  %v595_v62 = vpop.f32.mrf.mxu2  ;;  %v656_v63 = vand.u32 2147483648, %v644_v2  ;;  %v654_v43 = vand.u32 2147483647, %v644_v2  ;;  %vm650_vm3 = vweird.f32 %v644_v2 }
 0x144   : > { %v620_v55 = vadd.f32 %v595_v62, %v536_v44  ;;  %vm636_vm6 = vcmp.eq.f32.partialorder %v635_v0, 8.507059e+37 }
 0x145   : > { %vm655_vm7 = vcmp.eq.f32.partialorder %v654_v43, 8.507059e+37 }
 0x146   : > { %v1689_v54 = vpop.eup %1688 }
 0x147   : > { %v664_v51 = vadd.f32 1.0, %v1689_v54  ;;  %v638_v54 = vor.u32 1.1754944e-38, %v637_v60 }
 0x148   : > { %v1691_v52 = vpop.eup %1690 }
 0x149   : > { %v1693_v56 = vpop.eup %1692  ;;  %v627_v50 = vmul.f32 %v1691_v52, %v625_v46  ;;  %1694 = vrcp.f32 %v664_v51  ;;  %vm632_vm0 = vweird.f32 %v1691_v52  ;;  %vm670_vm9 = vweird.f32 %v664_v51 }
 0x14a   : > { %v646_v58 = vmul.f32 %v1693_v56, %v644_v2  ;;  %1696 = vtanh.f32 %v620_v55  ;;  %vm651_vm1 = vweird.f32 %v1693_v56  ;;  %vm633_vm4 = vmor %vm631_vm2, %vm632_vm0  ;;  %v657_v55 = vor.u32 1.1754944e-38, %v656_v63 }
 0x14b   : > { %v628_v48 = vsub.f32 1.0, %v627_v50  ;;  %vm652_vm5 = vmor %vm650_vm3, %vm651_vm1  ;;  %v529_v50 = vld [vmem:[#allocation3] sm:$0xff] }
 0x14c   : > { %v647_v59 = vsub.f32 1.0, %v646_v58 }
 0x14d   : > { %v629_v47 = vmul.f32 %v1691_v52, %v628_v48 }
 0x14e   : > { %v648_v1 = vmul.f32 %v1693_v56, %v647_v59 }
 0x14f   : > { %v1695_v42 = vpop.eup %1694  ;;  %v630_v40 = vadd.f32 %v1691_v52, %v629_v47 }
 0x150   : > { %v1697_v44 = vpop.eup %1696  ;;  %v666_v62 = vmul.f32 %v1695_v42, %v664_v51  ;;  %v649_v57 = vadd.f32 %v1693_v56, %v648_v1  ;;  %vm671_vm8 = vweird.f32 %v1695_v42  ;;  %v676_v1 = vand.u32 2147483648, %v664_v51 }
 0x151   : > { %v634_v58 = vsel %vm633_vm4, %v1691_v52, %v630_v40  ;;  %v674_v40 = vand.u32 2147483647, %v664_v51  ;;  %vm672_vm10 = vmor %vm670_vm9, %vm671_vm8 }
 0x152   : > { %v667_v48 = vsub.f32 1.0, %v666_v62  ;;  %v639_v39 = vsel %vm636_vm6, %v638_v54, %v634_v58  ;;  %v653_v59 = vsel %vm652_vm5, %v1693_v56, %v649_v57  ;;  %v677_v63 = vor.u32 1.1754944e-38, %v676_v1 }
 0x153   : > { %v658_v38 = vsel %vm655_vm7, %v657_v55, %v653_v59  ;;  %v681_v36 = vmul.f32 %v1697_v44, %v639_v39  ;;  %vm675_vm11 = vcmp.eq.f32.partialorder %v674_v40, 8.507059e+37 }
 0x154   : > { %v668_v47 = vmul.f32 %v1695_v42, %v667_v48  ;;  %v680_v46 = vmul.f32 %v658_v38, %v529_v50 }
 0x156   : > { %v2724_v2 = vadd.f32 %v681_v36, %v680_v46  ;;  %v669_v60 = vadd.f32 %v1695_v42, %v668_v47  ;;  %v1513_v36 = vld [vmem:[%s1349_s20 + $0x38] sm:$0xff] }
 0x158   : > { %1698 = vtanh.f32 %v2724_v2  ;;  %v673_v52 = vsel %vm672_vm10, %v1695_v42, %v669_v60 }
 0x159   : > { %v678_v57 = vsel %vm675_vm11, %v677_v63, %v673_v52 }
 0x15e   : > { %v1699_v43 = vpop.eup %1698 }
 0x15f   : > { %v684_v39 = vmul.f32 %v1699_v43, %v678_v57 }
 0x161   : > { %687 = vst [vmem:[%s686_s14] sm:$0xff] %v684_v39  ;;  %712 = vmatmul.f32.vlgmr.msrb.gmra.mxu0 %v684_v39  ;;  %732 = vmatmul.f32.vlgmr.msrb.gmra.mxu1 %v684_v39 }
 0x162   : > { %752 = vmatmul.f32.vlgmr.msrb.gmra.mxu2 %v684_v39  ;;  %772 = vmatmul.f32.vlgmr.msrb.gmra.mxu3 %v684_v39 }
 0x163   : > { %1013 = vmatpush.msrb.mxu0 %v3079_v61  ;;  %1033 = vmatpush.msrb.mxu1 %v2342_v3  ;;  %v3081_v3 = vld [vmem:[#allocation39_spill] sm:$0xff]  ;;  %v1512_v61 = vld [vmem:[%s1349_s20 + $0x30] sm:$0xff] }
 0x164   : > { %1053 = vmatpush.msrb.mxu2 %v2402_v19  ;;  %1073 = vmatpush.msrb.mxu3 %v2345_v4  ;;  %v3082_v4 = vld [vmem:[#allocation40_spill] sm:$0xff]  ;;  %v3097_v19 = vld [vmem:[#allocation51_spill] sm:$0xff] }
 0x165   : > { %1014 = vmatpush.msrb.mxu0 %v2350_v5  ;;  %1034 = vmatpush.msrb.mxu1 %v2353_v6  ;;  %v3083_v5 = vld [vmem:[#allocation41_spill] sm:$0xff]  ;;  %v3084_v6 = vld [vmem:[#allocation55_spill] sm:$0xff] }
 0x166   : > { %1054 = vmatpush.msrb.mxu2 %v2410_v21  ;;  %1074 = vmatpush.msrb.mxu3 %v2356_v7  ;;  %v3085_v7 = vld [vmem:[#allocation42_spill] sm:$0xff]  ;;  %v3099_v21 = vld [vmem:[#allocation53_spill] sm:$0xff] }
 0x167   : > { %1015 = vmatpush.msrb.mxu0 %v2360_v8  ;;  %1035 = vmatpush.msrb.mxu1 %v2363_v9  ;;  %v3086_v8 = vld [vmem:[#allocation43_spill] sm:$0xff]  ;;  %v3087_v9 = vld [vmem:[#allocation44_spill] sm:$0xff] }
 0x168   : > { %1055 = vmatpush.msrb.mxu2 %v2426_v25  ;;  %1075 = vmatpush.msrb.mxu3 %v2368_v10  ;;  %v3088_v10 = vld [vmem:[#allocation59_spill] sm:$0xff]  ;;  %v3103_v25 = vld [vmem:[#allocation57_spill] sm:$0xff] }
 0x169   : > { %1016 = vmatpush.msrb.mxu0 %v2372_v11  ;;  %1036 = vmatpush.msrb.mxu1 %v2375_v12  ;;  %v3089_v11 = vld [vmem:[#allocation45_spill] sm:$0xff]  ;;  %v3090_v12 = vld [vmem:[#allocation46_spill] sm:$0xff] }
 0x16a   : > { %1056 = vmatpush.msrb.mxu2 %v2442_v29  ;;  %1076 = vmatpush.msrb.mxu3 %v2380_v13  ;;  %v3091_v13 = vld [vmem:[#allocation47_spill] sm:$0xff]  ;;  %v1511_v29 = vld [vmem:[%s1349_s20 + $0x28] sm:$0xff] }
 0x16b   : > { %1017 = vmatpush.msrb.mxu0 %v2384_v14  ;;  %1037 = vmatpush.msrb.mxu1 %v2387_v15  ;;  %v3092_v14 = vld [vmem:[#allocation60_spill] sm:$0xff] }
 0x16c   : > { %1057 = vmatpush.msrb.mxu2 %v2458_v33  ;;  %1077 = vmatpush.msrb.mxu3 %v2392_v16  ;;  %v3093_v15 = vld [vmem:[#allocation48_spill] sm:$0xff]  ;;  %v3094_v16 = vld [vmem:[#allocation49_spill] sm:$0xff] }
 0x16d   : > { %1018 = vmatpush.msrb.mxu0 %v2396_v17  ;;  %1038 = vmatpush.msrb.mxu1 %v2399_v18  ;;  %v3095_v17 = vld [vmem:[#allocation50_spill] sm:$0xff]  ;;  %v3096_v18 = vld [vmem:[#allocation61_spill] sm:$0xff] }
 0x16e   : > { %1058 = vmatpush.msrb.mxu2 %v2474_v37  ;;  %1078 = vmatpush.msrb.mxu3 %v2407_v20  ;;  %v3098_v20 = vld [vmem:[#allocation52_spill] sm:$0xff] }
 0x16f   : > { %1019 = vmatpush.msrb.mxu0 %v2414_v22  ;;  %1039 = vmatpush.msrb.mxu1 %v2417_v23  ;;  %v3100_v22 = vld [vmem:[#allocation62_spill] sm:$0xff] }
 0x170   : > { %1059 = vmatpush.msrb.mxu2 %v2490_v41  ;;  %1079 = vmatpush.msrb.mxu3 %v2423_v24  ;;  %v3101_v23 = vld [vmem:[#allocation54_spill] sm:$0xff]  ;;  %v3102_v24 = vld [vmem:[#allocation56_spill] sm:$0xff] }
 0x171   : > { %1020 = vmatpush.msrb.mxu0 %v2430_v26  ;;  %1040 = vmatpush.msrb.mxu1 %v2433_v27  ;;  %v3104_v26 = vld [vmem:[#allocation63_spill] sm:$0xff]  ;;  %v3105_v27 = vld [vmem:[#allocation58_spill] sm:$0xff] }
 0x172   : > { %1060 = vmatpush.msrb.mxu2 %v2506_v45  ;;  %1080 = vmatpush.msrb.mxu3 %v2439_v28  ;;  %v1510_v28 = vld [vmem:[%s1349_s20 + $0x20] sm:$0xff] }
 0x173   : > { %1021 = vmatpush.msrb.mxu0 %v2446_v30  ;;  %1041 = vmatpush.msrb.mxu1 %v2449_v31 }
 0x174   : > { %1061 = vmatpush.msrb.mxu2 %v2522_v49  ;;  %1081 = vmatpush.msrb.mxu3 %v2455_v32 }
 0x175   : > { %1022 = vmatpush.msrb.mxu0 %v2462_v34  ;;  %1042 = vmatpush.msrb.mxu1 %v2465_v35 }
 0x176   : > { %1062 = vmatpush.msrb.mxu2 %v2538_v53  ;;  %1082 = vmatpush.msrb.mxu3 %v3081_v3 }
 0x177   : > { %1023 = vmatpush.msrb.mxu0 %v3082_v4  ;;  %1043 = vmatpush.msrb.mxu1 %v3083_v5 }
 0x178   : > { %1063 = vmatpush.msrb.mxu2 %v3084_v6  ;;  %1083 = vmatpush.msrb.mxu3 %v3085_v7 }
 0x179   : > { %1024 = vmatpush.msrb.mxu0 %v3086_v8  ;;  %1044 = vmatpush.msrb.mxu1 %v3087_v9 }
 0x17a   : > { %1064 = vmatpush.msrb.mxu2 %v3088_v10  ;;  %1084 = vmatpush.msrb.mxu3 %v3089_v11 }
 0x17b   : > { %1025 = vmatpush.msrb.mxu0 %v3090_v12  ;;  %1045 = vmatpush.msrb.mxu1 %v3091_v13 }
 0x17c   : > { %1065 = vmatpush.msrb.mxu2 %v3092_v14  ;;  %1085 = vmatpush.msrb.mxu3 %v3093_v15 }
 0x17d   : > { %1026 = vmatpush.msrb.mxu0 %v3094_v16  ;;  %1046 = vmatpush.msrb.mxu1 %v3095_v17 }
 0x17e   : > { %1066 = vmatpush.msrb.mxu2 %v3096_v18  ;;  %1086 = vmatpush.msrb.mxu3 %v3097_v19 }
 0x17f   : > { %1027 = vmatpush.msrb.mxu0 %v3098_v20  ;;  %1047 = vmatpush.msrb.mxu1 %v3099_v21  ;;  %v850_v21 = vld [vmem:[%s849_s19] sm:$0xff] }
 0x180   : > { %1067 = vmatpush.msrb.mxu2 %v3100_v22  ;;  %1087 = vmatpush.msrb.mxu3 %v3101_v23  ;;  %v851_v22 = vld [vmem:[%s849_s19 + $0x8] sm:$0xff] }
 0x181   : > { %1028 = vmatpush.msrb.mxu0 %v3102_v24  ;;  %1048 = vmatpush.msrb.mxu1 %v3103_v25 }
 0x182   : > { %1068 = vmatpush.msrb.mxu2 %v3104_v26  ;;  %1088 = vmatpush.msrb.mxu3 %v3105_v27 }
 0x1de   : > { %v713_v30 = vpop.f32.mrf.mxu0  ;;  %v733_v31 = vpop.f32.mrf.mxu1 }
 0x1df   : > { %v776_v32 = vadd.f32 %v1510_v28, %v713_v30  ;;  %v777_v33 = vadd.f32 %v1511_v29, %v733_v31  ;;  %v853_v29 = vld [vmem:[%s849_s19 + $0x18] sm:$0xff] }
 0x1e1   : > { %v1514_v34 = vmul.f32 -1.442695, %v776_v32  ;;  %v1515_v35 = vmul.f32 -1.442695, %v777_v33 }
 0x1e3   : > { %1700 = vpow2.f32 %v1514_v34 }
 0x1e4   : > { %1702 = vpow2.f32 %v1515_v35 }
 0x1e5   : > { %v773_v37 = vpop.f32.mrf.mxu3  ;;  %v753_v51 = vpop.f32.mrf.mxu2 }
 0x1e6   : > { %v779_v38 = vadd.f32 %v1513_v36, %v773_v37  ;;  %v778_v62 = vadd.f32 %v1512_v61, %v753_v51  ;;  %v852_v37 = vld [vmem:[%s849_s19 + $0x10] sm:$0xff] }
 0x1e8   : > { %v1516_v41 = vmul.f32 -1.442695, %v779_v38 }
 0x1e9   : > { %v1701_v42 = vpop.eup %1700 }
 0x1ea   : > { %v1703_v45 = vpop.eup %1702  ;;  %v783_v49 = vadd.f32 1.0, %v1701_v42  ;;  %1704 = vpow2.f32 %v1516_v41 }
 0x1eb   : > { %v802_v53 = vadd.f32 1.0, %v1703_v45 }
 0x1ec   : > { %1706 = vrcp.f32 %v783_v49  ;;  %v795_v59 = vand.u32 2147483648, %v783_v49  ;;  %v793_v60 = vand.u32 2147483647, %v783_v49  ;;  %vm789_vm14 = vweird.f32 %v783_v49 }
 0x1ed   : > { %1708 = vrcp.f32 %v802_v53  ;;  %v814_v47 = vand.u32 2147483648, %v802_v53  ;;  %v812_v40 = vand.u32 2147483647, %v802_v53  ;;  %vm808_vm15 = vweird.f32 %v802_v53 }
 0x1ee   : > { %v796_v43 = vor.u32 1.1754944e-38, %v795_v59  ;;  %vm794_vm2 = vcmp.eq.f32.partialorder %v793_v60, 8.507059e+37 }
 0x1ef   : > { %v815_v3 = vor.u32 1.1754944e-38, %v814_v47  ;;  %vm813_vm3 = vcmp.eq.f32.partialorder %v812_v40, 8.507059e+37 }
 0x1f0   : > { %v1705_v56 = vpop.eup %1704 }
 0x1f1   : > { %v822_v0 = vadd.f32 1.0, %v1705_v56 }
 0x1f2   : > { %v1707_v44 = vpop.eup %1706 }
 0x1f3   : > { %v1709_v54 = vpop.eup %1708  ;;  %v785_v55 = vmul.f32 %v1707_v44, %v783_v49  ;;  %1710 = vrcp.f32 %v822_v0  ;;  %vm790_vm12 = vweird.f32 %v1707_v44  ;;  %v834_v15 = vand.u32 2147483648, %v822_v0 }
 0x1f4   : > { %v804_v50 = vmul.f32 %v1709_v54, %v802_v53  ;;  %1712 = vtanh.f32 %v778_v62  ;;  %vm809_vm13 = vweird.f32 %v1709_v54  ;;  %vm791_vm0 = vmor %vm789_vm14, %vm790_vm12  ;;  %vm828_vm5 = vweird.f32 %v822_v0 }
 0x1f5   : > { %v786_v58 = vsub.f32 1.0, %v785_v55  ;;  %vm810_vm1 = vmor %vm808_vm15, %vm809_vm13  ;;  %v832_v16 = vand.u32 2147483647, %v822_v0 }
 0x1f6   : > { %v805_v48 = vsub.f32 1.0, %v804_v50 }
 0x1f7   : > { %v787_v46 = vmul.f32 %v1707_v44, %v786_v58  ;;  %vm833_vm7 = vcmp.eq.f32.partialorder %v832_v16, 8.507059e+37  ;;  %v1527_v16 = vld [vmem:[%s1360_s7 + $0x68] sm:$0xff] }
 0x1f8   : > { %v806_v1 = vmul.f32 %v1709_v54, %v805_v48 }
 0x1f9   : > { %v1711_v52 = vpop.eup %1710  ;;  %v788_v63 = vadd.f32 %v1707_v44, %v787_v46 }
 0x1fa   : > { %v807_v57 = vadd.f32 %v1709_v54, %v806_v1  ;;  %v824_v39 = vmul.f32 %v1711_v52, %v822_v0  ;;  %v1713_v5 = vpop.eup %1712  ;;  %vm829_vm4 = vweird.f32 %v1711_v52 }
 0x1fb   : > { %v792_v4 = vsel %vm791_vm0, %v1707_v44, %v788_v63  ;;  %vm830_vm6 = vmor %vm828_vm5, %vm829_vm4 }
 0x1fc   : > { %v797_v6 = vsel %vm794_vm2, %v796_v43, %v792_v4  ;;  %v811_v7 = vsel %vm810_vm1, %v1709_v54, %v807_v57  ;;  %v825_v8 = vsub.f32 1.0, %v824_v39 }
 0x1fd   : > { %v816_v9 = vsel %vm813_vm3, %v815_v3, %v811_v7  ;;  %v839_v10 = vmul.f32 %v1713_v5, %v797_v6 }
 0x1fe   : > { %v838_v11 = vmul.f32 %v816_v9, %v2724_v2  ;;  %v826_v12 = vmul.f32 %v1711_v52, %v825_v8  ;;  %v835_v2 = vor.u32 1.1754944e-38, %v834_v15  ;;  %v1526_v15 = vld [vmem:[%s1360_s7 + $0x60] sm:$0xff] }
 0x200   : > { %v2796_v13 = vadd.f32 %v839_v10, %v838_v11  ;;  %v827_v14 = vadd.f32 %v1711_v52, %v826_v12 }
 0x202   : > { %1714 = vtanh.f32 %v2796_v13  ;;  %v831_v17 = vsel %vm830_vm6, %v1711_v52, %v827_v14 }
 0x203   : > { %v836_v19 = vsel %vm833_vm7, %v835_v2, %v831_v17 }
 0x208   : > { %v1715_v18 = vpop.eup %1714 }
 0x209   : > { %v842_v20 = vmul.f32 %v1715_v18, %v836_v19 }
 0x20b   : > { %1518 = vst [vmem:[%s1352_s5 + $0x8] sm:$0xff] %v842_v20  ;;  %870 = vmatmul.f32.vlgmr.msra.gmra.mxu0 %v842_v20  ;;  %890 = vmatmul.f32.vlgmr.msra.gmra.mxu1 %v842_v20 }
 0x20c   : > { %910 = vmatmul.f32.vlgmr.msra.gmra.mxu2 %v842_v20  ;;  %930 = vmatmul.f32.vlgmr.msra.gmra.mxu3 %v842_v20 }
 0x288   : > { %v871_v23 = vpop.f32.mrf.mxu0  ;;  %v891_v24 = vpop.f32.mrf.mxu1 }
 0x289   : > { %v934_v25 = vadd.f32 %v871_v23, %v850_v21  ;;  %v935_v26 = vadd.f32 %v891_v24, %v851_v22  ;;  %v1529_v22 = vld [vmem:[%s1360_s7 + $0x78] sm:$0xff] }
 0x28b   : > { %v1521_v27 = vmul.f32 -1.442695, %v934_v25  ;;  %v1522_v28 = vmul.f32 -1.442695, %v935_v26 }
 0x28d   : > { %1716 = vpow2.f32 %v1521_v27 }
 0x28e   : > { %1718 = vpow2.f32 %v1522_v28 }
 0x28f   : > { %v931_v30 = vpop.f32.mrf.mxu3  ;;  %v911_v38 = vpop.f32.mrf.mxu2 }
 0x290   : > { %v937_v31 = vadd.f32 %v931_v30, %v853_v29  ;;  %v936_v49 = vadd.f32 %v911_v38, %v852_v37  ;;  %v1528_v30 = vld [vmem:[%s1360_s7 + $0x70] sm:$0xff] }
 0x292   : > { %v1523_v32 = vmul.f32 -1.442695, %v937_v31 }
 0x293   : > { %v1717_v33 = vpop.eup %1716 }
 0x294   : > { %v1719_v34 = vpop.eup %1718  ;;  %v941_v35 = vadd.f32 1.0, %v1717_v33  ;;  %1720 = vpow2.f32 %v1523_v32 }
 0x295   : > { %v960_v36 = vadd.f32 1.0, %v1719_v34 }
 0x296   : > { %1722 = vrcp.f32 %v941_v35  ;;  %v953_v44 = vand.u32 2147483648, %v941_v35  ;;  %v951_v55 = vand.u32 2147483647, %v941_v35  ;;  %vm947_vm10 = vweird.f32 %v941_v35 }
 0x297   : > { %1724 = vrcp.f32 %v960_v36  ;;  %v972_v62 = vand.u32 2147483648, %v960_v36  ;;  %v970_v58 = vand.u32 2147483647, %v960_v36  ;;  %vm966_vm11 = vweird.f32 %v960_v36 }
 0x298   : > { %v954_v47 = vor.u32 1.1754944e-38, %v953_v44  ;;  %vm952_vm14 = vcmp.eq.f32.partialorder %v951_v55, 8.507059e+37 }
 0x299   : > { %v973_v1 = vor.u32 1.1754944e-38, %v972_v62  ;;  %vm971_vm15 = vcmp.eq.f32.partialorder %v970_v58, 8.507059e+37 }
 0x29a   : > { %v1721_v41 = vpop.eup %1720 }
 0x29b   : > { %v980_v42 = vadd.f32 1.0, %v1721_v41 }
 0x29c   : > { %v1723_v45 = vpop.eup %1722 }
 0x29d   : > { %v1725_v53 = vpop.eup %1724  ;;  %v943_v61 = vmul.f32 %v1723_v45, %v941_v35  ;;  %1726 = vrcp.f32 %v980_v42  ;;  %vm948_vm8 = vweird.f32 %v1723_v45  ;;  %v992_v8 = vand.u32 2147483648, %v980_v42 }
 0x29e   : > { %v962_v51 = vmul.f32 %v1725_v53, %v960_v36  ;;  %1728 = vtanh.f32 %v936_v49  ;;  %vm967_vm9 = vweird.f32 %v1725_v53  ;;  %vm949_vm12 = vmor %vm947_vm10, %vm948_vm8  ;;  %vm986_vm1 = vweird.f32 %v980_v42 }
 0x29f   : > { %v944_v56 = vsub.f32 1.0, %v943_v61  ;;  %vm968_vm13 = vmor %vm966_vm11, %vm967_vm9  ;;  %v990_v9 = vand.u32 2147483647, %v980_v42  ;;  %v993_v11 = vor.u32 1.1754944e-38, %v992_v8 }
 0x2a0   : > { %v963_v0 = vsub.f32 1.0, %v962_v51 }
 0x2a1   : > { %v945_v54 = vmul.f32 %v1723_v45, %v944_v56  ;;  %vm991_vm3 = vcmp.eq.f32.partialorder %v990_v9, 8.507059e+37 }
 0x2a2   : > { %v964_v50 = vmul.f32 %v1725_v53, %v963_v0 }
 0x2a3   : > { %v1727_v48 = vpop.eup %1726  ;;  %v946_v59 = vadd.f32 %v1723_v45, %v945_v54 }
 0x2a4   : > { %v965_v46 = vadd.f32 %v1725_v53, %v964_v50  ;;  %v982_v60 = vmul.f32 %v1727_v48, %v980_v42  ;;  %v1729_v52 = vpop.eup %1728  ;;  %vm987_vm0 = vweird.f32 %v1727_v48 }
 0x2a5   : > { %v950_v40 = vsel %vm949_vm12, %v1723_v45, %v946_v59  ;;  %vm988_vm2 = vmor %vm986_vm1, %vm987_vm0 }
 0x2a6   : > { %v955_v63 = vsel %vm952_vm14, %v954_v47, %v950_v40  ;;  %v969_v43 = vsel %vm968_vm13, %v1725_v53, %v965_v46  ;;  %v983_v57 = vsub.f32 1.0, %v982_v60 }
 0x2a7   : > { %v974_v39 = vsel %vm971_vm15, %v973_v1, %v969_v43  ;;  %v997_v3 = vmul.f32 %v1729_v52, %v955_v63 }
 0x2a8   : > { %v996_v4 = vmul.f32 %v974_v39, %v2796_v13  ;;  %v984_v5 = vmul.f32 %v1727_v48, %v983_v57 }
 0x2aa   : > { %v2809_v6 = vadd.f32 %v997_v3, %v996_v4  ;;  %v985_v7 = vadd.f32 %v1727_v48, %v984_v5 }
 0x2ac   : > { %1730 = vtanh.f32 %v2809_v6  ;;  %v989_v10 = vsel %vm988_vm2, %v1727_v48, %v985_v7 }
 0x2ad   : > { %v994_v13 = vsel %vm991_vm3, %v993_v11, %v989_v10 }
 0x2b2   : > { %v1731_v12 = vpop.eup %1730 }
 0x2b3   : > { %v1000_v14 = vmul.f32 %v1731_v12, %v994_v13 }
 0x2b5   : > { %1003 = vst [vmem:[%s1002_s27] sm:$0xff] %v1000_v14  ;;  %1029 = vmatmul.f32.vlgmr.msrb.gmra.mxu0 %v1000_v14  ;;  %1049 = vmatmul.f32.vlgmr.msrb.gmra.mxu1 %v1000_v14 }
 0x2b6   : > { %1069 = vmatmul.f32.vlgmr.msrb.gmra.mxu2 %v1000_v14  ;;  %1089 = vmatmul.f32.vlgmr.msrb.gmra.mxu3 %v1000_v14 }
 0x332   : > { %v1030_v17 = vpop.f32.mrf.mxu0  ;;  %v1050_v2 = vpop.f32.mrf.mxu1 }
 0x333   : > { %v1093_v18 = vadd.f32 %v1526_v15, %v1030_v17  ;;  %v1094_v19 = vadd.f32 %v1527_v16, %v1050_v2 }
 0x335   : > { %v1530_v20 = vmul.f32 -1.442695, %v1093_v18  ;;  %v1531_v21 = vmul.f32 -1.442695, %v1094_v19 }
 0x337   : > { %1732 = vpow2.f32 %v1530_v20 }
 0x338   : > { %1734 = vpow2.f32 %v1531_v21 }
 0x339   : > { %v1090_v23 = vpop.f32.mrf.mxu3  ;;  %v1070_v31 = vpop.f32.mrf.mxu2 }
 0x33a   : > { %v1096_v24 = vadd.f32 %v1529_v22, %v1090_v23  ;;  %v1095_v35 = vadd.f32 %v1528_v30, %v1070_v31 }
 0x33c   : > { %v1532_v25 = vmul.f32 -1.442695, %v1096_v24 }
 0x33d   : > { %v1733_v26 = vpop.eup %1732 }
 0x33e   : > { %v1735_v27 = vpop.eup %1734  ;;  %v1100_v28 = vadd.f32 1.0, %v1733_v26  ;;  %1736 = vpow2.f32 %v1532_v25 }
 0x33f   : > { %v1119_v29 = vadd.f32 1.0, %v1735_v27 }
 0x340   : > { %1738 = vrcp.f32 %v1100_v28  ;;  %v1112_v45 = vand.u32 2147483648, %v1100_v28  ;;  %v1110_v61 = vand.u32 2147483647, %v1100_v28  ;;  %vm1106_vm6 = vweird.f32 %v1100_v28 }
 0x341   : > { %1740 = vrcp.f32 %v1119_v29  ;;  %v1131_v49 = vand.u32 2147483648, %v1119_v29  ;;  %v1129_v56 = vand.u32 2147483647, %v1119_v29  ;;  %vm1125_vm7 = vweird.f32 %v1119_v29 }
 0x342   : > { %v1113_v62 = vor.u32 1.1754944e-38, %v1112_v45  ;;  %vm1111_vm10 = vcmp.eq.f32.partialorder %v1110_v61, 8.507059e+37 }
 0x343   : > { %v1132_v50 = vor.u32 1.1754944e-38, %v1131_v49  ;;  %vm1130_vm11 = vcmp.eq.f32.partialorder %v1129_v56, 8.507059e+37 }
 0x344   : > { %v1737_v32 = vpop.eup %1736 }
 0x345   : > { %v1139_v33 = vadd.f32 1.0, %v1737_v32 }
 0x346   : > { %v1739_v34 = vpop.eup %1738 }
 0x347   : > { %v1741_v36 = vpop.eup %1740  ;;  %v1102_v37 = vmul.f32 %v1739_v34, %v1100_v28  ;;  %1742 = vrcp.f32 %v1139_v33  ;;  %vm1107_vm4 = vweird.f32 %v1739_v34  ;;  %v1151_v57 = vand.u32 2147483648, %v1139_v33 }
 0x348   : > { %v1121_v38 = vmul.f32 %v1741_v36, %v1119_v29  ;;  %1744 = vtanh.f32 %v1095_v35  ;;  %vm1126_vm5 = vweird.f32 %v1741_v36  ;;  %vm1108_vm8 = vmor %vm1106_vm6, %vm1107_vm4  ;;  %vm1145_vm13 = vweird.f32 %v1139_v33 }
 0x349   : > { %v1103_v41 = vsub.f32 1.0, %v1102_v37  ;;  %vm1127_vm9 = vmor %vm1125_vm7, %vm1126_vm5  ;;  %v1149_v39 = vand.u32 2147483647, %v1139_v33  ;;  %v1152_v4 = vor.u32 1.1754944e-38, %v1151_v57 }
 0x34a   : > { %v1122_v42 = vsub.f32 1.0, %v1121_v38 }
 0x34b   : > { %v1104_v53 = vmul.f32 %v1739_v34, %v1103_v41  ;;  %vm1150_vm15 = vcmp.eq.f32.partialorder %v1149_v39, 8.507059e+37 }
 0x34c   : > { %v1123_v51 = vmul.f32 %v1741_v36, %v1122_v42 }
 0x34d   : > { %v1743_v0 = vpop.eup %1742  ;;  %v1105_v44 = vadd.f32 %v1739_v34, %v1104_v53 }
 0x34e   : > { %v1124_v54 = vadd.f32 %v1741_v36, %v1123_v51  ;;  %v1141_v55 = vmul.f32 %v1743_v0, %v1139_v33  ;;  %v1745_v48 = vpop.eup %1744  ;;  %vm1146_vm12 = vweird.f32 %v1743_v0 }
 0x34f   : > { %v1109_v58 = vsel %vm1108_vm8, %v1739_v34, %v1105_v44  ;;  %vm1147_vm14 = vmor %vm1145_vm13, %vm1146_vm12 }
 0x350   : > { %v1114_v59 = vsel %vm1111_vm10, %v1113_v62, %v1109_v58  ;;  %v1128_v47 = vsel %vm1127_vm9, %v1741_v36, %v1124_v54  ;;  %v1142_v46 = vsub.f32 1.0, %v1141_v55 }
 0x351   : > { %v1133_v60 = vsel %vm1130_vm11, %v1132_v50, %v1128_v47  ;;  %v1156_v1 = vmul.f32 %v1745_v48, %v1114_v59 }
 0x352   : > { %v1155_v40 = vmul.f32 %v1133_v60, %v2809_v6  ;;  %v1143_v52 = vmul.f32 %v1743_v0, %v1142_v46 }
 0x354   : > { %v1157_v63 = vadd.f32 %v1156_v1, %v1155_v40  ;;  %v1144_v43 = vadd.f32 %v1743_v0, %v1143_v52 }
 0x356   : > { %1746 = vtanh.f32 %v1157_v63  ;;  %1164 = vst [vmem:[#allocation3] sm:$0xff] %v1157_v63  ;;  %v1148_v3 = vsel %vm1147_vm14, %v1743_v0, %v1144_v43 }
 0x357   : > { %v1153_v7 = vsel %vm1150_vm15, %v1152_v4, %v1148_v3 }
 0x35c   : > { %v1747_v5 = vpop.eup %1746  ;;  %1168 = sbr.rel (%p1535_p11) target bundleno = 867 (0x363), region = 60 }
 0x35d   : > { %v1159_v8 = vmul.f32 %v1747_v5, %v1153_v7 }
 0x35f   : > { %1534 = vst [vmem:[%s1364_s4 + $0x18] sm:$0xff] %v1159_v8 }
 0x360   : > { %1163 = vst [vmem:[#allocation2] sm:$0xff] %v1159_v8 }
 0x361   : > { %1169 = vst [vmem:[%s438_s3] sm:$0xff] %v1159_v8 }
 0x362   : > { %1170 = vst [vmem:[%s3001_s21] sm:$0xff] %v1157_v63 }
 0x363 PF: > { %s3107_s28 = sld [smem:[#allocation69_spill]]  ;;  %s1217_s11 = sshll.u32 %s438_s3, 4  ;;  %s1218_s11 = int_to_ptr.vmem [resolvable:$true] %s1217_s11 }
 0x364   : > { %s2833_s19 = scalar_lea.sflag [#allocation14], %s367_s9 }
 0x369   : > { %s3108_s14 = smov %s3107_s28  ;;  %s1215_s5 = scalar_lea.hbm %s3107_s28, %s2800_s29 }
 0x36a   : > { %s1219_s18 = sshll.u32 %s1215_s5, 4  ;;  %s1888_s13 = scalar_lea.hbm %s3108_s14, 16  ;;  %s1220_s18 = int_to_ptr.hbm [resolvable:$true] %s1219_s18 }
 0x36b   : > { %s1882_s10 = sshra.s32 %s1220_s18, 4  ;;  %s1883_s10 = int_to_ptr.hbm [resolvable:$true] %s1882_s10 }
 0x36c   : > { %s1884_s27 = scalar_lea.hbm %s1883_s10, 8  ;;  %p1889_p4 = scmp.lt.s32.totalorder %s1883_s10, %s3108_s14 }
 0x36d   : > { %p1885_p0 = scmp.ne.s32.totalorder %s1883_s10, %s1884_s27  ;;  %p1890_p6 = scmp.lt.s32.totalorder %s1888_s13, %s1884_s27 }
 0x36f   : > { %p1886_p2 = pnand %p1885_p0, %p2200_p1  ;;  %p1891_p8 = por %p1890_p6, %p1889_p4 }
 0x371   : > { %p1887_p7 = pneg %p1886_p2 }
 0x373   : > { %p1892_p9 = pnand %p1891_p8, %p1887_p7 }
 0x375   : > { %1895 = shalt.err (!%p1892_p9)
}
 0x376   : > { %s3111_s9 = sld [smem:[#allocation24_spill]]  ;;  %s1200_s28 = sshll.u32 %s2333_s8, 4  ;;  %s2849_s28 = int_to_ptr.vmem [resolvable:$true] %s1200_s28 }
 0x377   : > { %s3112_s3 = sld [smem:[#allocation25_spill]]  ;;  %s3116_s0 = scalar_lea.vmem [#allocation15], %s2316_s17 }
 0x378   : > { %1561 = dma.vmem_to_hbm [thread:$0]  (%p2200_p1), %s1218_s11, 128, %s1220_s18, %s2833_s19  }
 0x379   : > { %s3113_s7 = sld [smem:[#allocation70_spill]]  ;;  %s2859_s14 = sshll.u32 %s3116_s0, 4  ;;  %s1232_s14 = int_to_ptr.vmem [resolvable:$true] %s2859_s14 }
 0x37a   : > { %s3117_s8 = sld [smem:[#allocation68_spill]] }
 0x37c   : > { %s1539_s24 = sshll.u32 %s3111_s9, 1 }
 0x37d   : > { %s1190_s1 = ssub.s32 1, %s1539_s24 }
 0x37e   : > { %s1191_s6 = smul.u32 %s3112_s3, %s1190_s1 }
 0x37f   : > { %s3114_s13 = smov %s3113_s7  ;;  %s1229_s2 = scalar_lea.hbm %s3113_s7, %s2800_s29 }
 0x380   : > { %s1192_s5 = sadd.s32 %s3111_s9, %s1191_s6  ;;  %s2865_s15 = sshll.u32 %s1229_s2, 4  ;;  %s1234_s15 = int_to_ptr.hbm [resolvable:$true] %s2865_s15 }
 0x381   : > { %s1551_s10 = sshll.u32 %s1192_s5, 3  ;;  %s1172_s6 = scalar_lea.sflag [#allocation6], %s2304_s16 }
 0x382   : > { %s1197_s21 = sadd.s32 %s3112_s3, %s1551_s10 }
 0x383   : > { %s1542_s11 = sshll.u32 %s1197_s21, 3  ;;  %s1916_s21 = scalar_lea.hbm %s3117_s8, 128 }
 0x384   : > { %s1199_s1 = scalar_lea.hbm %s3117_s8, %s1542_s11 }
 0x385   : > { %s1202_s9 = sshll.u32 %s1199_s1, 4  ;;  %s1203_s9 = int_to_ptr.hbm [resolvable:$true] %s1202_s9 }
 0x386   : > { %s1910_s5 = sshra.s32 %s1203_s9, 4  ;;  %s1911_s5 = int_to_ptr.hbm [resolvable:$true] %s1910_s5 }
 0x387   : > { %s1912_s29 = scalar_lea.hbm %s1911_s5, 32  ;;  %p1917_p13 = scmp.lt.s32.totalorder %s1911_s5, %s3117_s8 }
 0x388   : > { %p1913_p10 = scmp.ne.s32.totalorder %s1911_s5, %s1912_s29  ;;  %p1918_p11 = scmp.lt.s32.totalorder %s1916_s21, %s1912_s29 }
 0x38a   : > { %p1914_p3 = pnand %p1913_p10, %p2192_p12  ;;  %p1919_p0 = por %p1918_p11, %p1917_p13 }
 0x38c   : > { %p1915_p5 = pneg %p1914_p3 }
 0x38e   : > { %p1920_p2 = pnand %p1919_p0, %p1915_p5 }
 0x390   : > { %1923 = shalt.err (!%p1920_p2)
}
 0x391   : > { %s2062_s16 = smov 128   ;;  %s2063_s27 = smov 256  }
 0x392   : > { %s2064_s22 = smov 8   ;;  %s1938_s7 = sshra.s32 %s1234_s15, 4  ;;  %s1939_s7 = int_to_ptr.hbm [resolvable:$true] %s1938_s7 }
 0x393   : > { %1560 = dma.vmem_to_hbm [thread:$0]  (%p2192_p12), %s2849_s28, 512, %s1203_s9, %s1172_s6, %s2062_s16, %s2063_s27, %s2064_s22  }
 0x394   : > { %s1940_s2 = scalar_lea.hbm %s1939_s7, 8  ;;  %s1944_s24 = scalar_lea.hbm %s3114_s13, 16 }
 0x395   : > { %p1941_p7 = scmp.ne.s32.totalorder %s1939_s7, %s1940_s2  ;;  %p1945_p8 = scmp.lt.s32.totalorder %s1939_s7, %s3114_s13 }
 0x396   : > { %p1946_p9 = scmp.lt.s32.totalorder %s1944_s24, %s1940_s2 }
 0x397   : > { %p1942_p4 = pnand %p1941_p7, %p2200_p1 }
 0x398   : > { %p1947_p10 = por %p1946_p9, %p1945_p8 }
 0x399   : > { %p1943_p6 = pneg %p1942_p4 }
 0x39b   : > { %p1948_p3 = pnand %p1947_p10, %p1943_p6 }
 0x39d   : > { %1951 = shalt.err (!%p1948_p3)
}
 0x39e   : > { %1562 = dma.vmem_to_hbm [thread:$0]  (%p2200_p1), %s1232_s14, 128, %s1234_s15, %s2833_s19  }
 0x39f PF: > { %s3118_s28 = sld [smem:[#allocation27_spill]] }
 0x3a0   : > { %s3119_s4 = sld [smem:[#allocation22_spill]] }
 0x3a1   : > { %s3120_s9 = sld [smem:[#allocation32_spill]] }
 0x3a5   : > { %p1590_p12 = scmp.ge.s32.totalorder %s3118_s28, 2 }
 0x3a6   : > { %s1245_s6 = sand.u32 1, %s3119_s4  }
 0x3a7   : > { %p3121_p5 = scmp.ne.s32.totalorder %s3120_s9, 0  ;;  %s1246_s29 = scalar_lea.sflag [#allocation6], %s1245_s6 }
 0x3a9   : > { %p1580_p13 = pnand %p1590_p12, %p3121_p5 }
 0x3ab   : > { %p1581_p11 = pneg %p1580_p13 }
 0x3ad   : > { %2009 = dma.done.wait (%p1581_p11), %s1246_s29, 512  }
 0x3ae   : > { %2011 = vsyncadd (%p1581_p11), %s1246_s29, 4294966784  ;;  %s3122_s20 = sadd.s32 4294967294, %s3118_s28   ;;  %s3123_s0 = sld [smem:[#allocation34_spill]] }
 0x3af   : > { %s1255_s17 = sand.u32 1, %s3122_s20  }
 0x3b0   : > { %s1256_s15 = scalar_lea.sflag [#allocation14], %s1255_s17 }
 0x3b4   : > { %p3124_p0 = scmp.ne.s32.totalorder %s3123_s0, 0 }
 0x3b6   : > { %p1583_p2 = pnand %p1590_p12, %p3124_p0 }
 0x3b8   : > { %p1584_p7 = pneg %p1583_p2 }
 0x3ba   : > { %2013 = dma.done.wait (%p1584_p7), %s1256_s15, 256  }
 0x3bb   : > { %2015 = vsyncadd (%p1584_p7), %s1256_s15, 4294967040  ;;  %s32_s7 = sadd.s32 1, %s3118_s28   ;;  %s3125_s21 = sld [smem:[#allocation21_spill]] }
 0x3bc   : > { %p29_p1 = scmp.ge.s32.totalorder %s32_s7, 6   ;;  %s3126_s24 = sld [smem:[#allocation23_spill]] }
 0x3bd   : > { %s3127_s14 = smov %s2272_s25  ;;  %s3128_s27 = sld [smem:[#allocation26_spill]] }
 0x3be   : > { %s3129_s29 = sld [smem:[#allocation36_spill]]  ;;  %s3131_s22 = smov %s2026_s23 }
 0x3bf   : > { %s3130_s19 = sld [smem:[#allocation37_spill]]  ;;  %s3132_s23 = smov %s2269_s12 }
 0x3c0   : > { %s3133_s25 = smov %s2038_s26  ;;  %s3134_s26 = smov %s3127_s14 }
 0x3c1   : > { %s3135_s28 = smov %s2054_s30  ;;  %31 = sbr.rel (!%p29_p1) target bundleno = 23 (0x17), region = 166 }
 0x3c5   : > { %s3136_s30 = smov %s3130_s19 }
 0x3c6   :  { %1272 = vsyncpa [#allocation5], 1 }
 0x3c7   :  { %1274 = vsyncpa [#allocation5 + $0x1], 1 }
 0x3c8   :  { %1275 = vsyncpa [#allocation8], 1 }
 0x3c9   :  { %1277 = vsyncpa [#allocation8 + $0x1], 1 }
 0x3ca   :  { %1278 = vsyncpa [#allocation11], 1 }
 0x3cb   :  { %1280 = vsyncpa [#allocation11 + $0x1], 1 }
 0x3cc   :  { %1281 = vsyncpa [#allocation6], 1 }
 0x3cd   :  { %1283 = vsyncpa [#allocation6 + $0x1], 1 }
 0x3ce   :  { %1284 = vsyncpa [#allocation14], 1 }
 0x3cf   :  { %1286 = vsyncpa [#allocation14 + $0x1], 1 }

</bundles_post_ra>
